<compile_context>
chip_gen: v6e
topology: v6e:2x2x1
jax: 0.10.0
libtpu: 0.0.40
codegen_flags: <defaults>
</compile_context>

<pallas_src>
import functools
import math

import jax
import jax.numpy as jnp
from jax.experimental import pallas as pl
from jax.experimental.pallas import tpu as pltpu

# ---------------- config (small synthetic BERT) ----------------
VOCAB = 100
TYPE_VOCAB = 2
MAX_POS = 16
HIDDEN = 32
NUM_HEADS = 2
HEAD_DIM = HIDDEN // NUM_HEADS
INTERMEDIATE = 64
NUM_LAYERS = 2
NUM_CLASSES = 4
LN_EPS = 1e-12

SLAB_COLS = 128  # lane width of the packed parameter slab

_VMEM = pl.BlockSpec(memory_space=pltpu.MemorySpace.VMEM)


# ---------------- packed parameter-slab layout ----------------
def _build_param_layout():
    """Row layout of the single packed (rows, 128) f32 parameter slab.

    Every parameter occupies a contiguous row range starting at a multiple of
    8 (sublane-tile aligned); columns are zero-padded out to 128 lanes.
    """
    entries = [
        ("word_emb", VOCAB, HIDDEN),
        ("pos_emb", MAX_POS, HIDDEN),
        ("type_emb", TYPE_VOCAB, HIDDEN),
        ("emb_ln_g", 1, HIDDEN),
        ("emb_ln_b", 1, HIDDEN),
    ]
    for l in range(NUM_LAYERS):
        entries += [
            (f"wqkv_{l}", HIDDEN, 3 * HIDDEN),
            (f"bqkv_{l}", 1, 3 * HIDDEN),
            (f"wo_{l}", HIDDEN, HIDDEN),
            (f"bo_{l}", 1, HIDDEN),
            (f"ln1_g_{l}", 1, HIDDEN),
            (f"ln1_b_{l}", 1, HIDDEN),
            (f"w1_{l}", HIDDEN, INTERMEDIATE),
            (f"b1_{l}", 1, INTERMEDIATE),
            (f"w2_{l}", INTERMEDIATE, HIDDEN),
            (f"b2_{l}", 1, HIDDEN),
            (f"ln2_g_{l}", 1, HIDDEN),
            (f"ln2_b_{l}", 1, HIDDEN),
        ]
    entries += [
        ("wp", HIDDEN, HIDDEN),
        ("bp", 1, HIDDEN),
        ("wfc", HIDDEN, NUM_CLASSES),
        ("bfc", 1, NUM_CLASSES),
    ]
    layout, off = {}, 0
    for name, rows, cols in entries:
        assert cols <= SLAB_COLS
        layout[name] = (off, rows, cols)
        off += ((rows + 7) // 8) * 8  # keep every block 8-row aligned
    return layout, off


PARAM_LAYOUT, SLAB_ROWS = _build_param_layout()


# ---------------- fused Pallas kernel: full BERT forward ----------------
def _bert_kernel(ids_ref, types_ref, mask_ref, slab_ref, out_ref, *, batch, seq):
    f32 = jnp.float32
    n = batch * seq

    def param(name):
        off, rows, cols = PARAM_LAYOUT[name]
        return slab_ref[off:off + rows, :cols]

    def layer_norm(v, g, b):
        mean = jnp.mean(v, axis=-1, keepdims=True)
        var = jnp.mean((v - mean) ** 2, axis=-1, keepdims=True)
        return (v - mean) * jax.lax.rsqrt(var + LN_EPS) * g + b

    def gelu(v):
        # tanh approximation.  TODO(synk): exact erf-GELU differs by ~1e-3.
        c = f32(math.sqrt(2.0 / math.pi))
        return 0.5 * v * (1.0 + jnp.tanh(c * (v + 0.044715 * (v ** 3))))

    # ---- embeddings: in-kernel one-hot gathers (no HBM round trip) ----
    ids = ids_ref[...]                                    # (n, 1) int32
    types = types_ref[...]                                # (n, 1) int32

    word_oh = (jax.lax.broadcasted_iota(jnp.int32, (n, VOCAB), 1) == ids
               ).astype(f32)                              # (n, VOCAB)
    x = jnp.dot(word_oh, param("word_emb"), preferred_element_type=f32)

    type_oh = (jax.lax.broadcasted_iota(jnp.int32, (n, TYPE_VOCAB), 1) == types
               ).astype(f32)                              # (n, TYPE_VOCAB)
    x = x + jnp.dot(type_oh, param("type_emb"), preferred_element_type=f32)

    pos_off = PARAM_LAYOUT["pos_emb"][0]
    pos_rows = slab_ref[pos_off:pos_off + seq, :HIDDEN]   # (seq, HIDDEN)
    x = x + jnp.concatenate([pos_rows] * batch, axis=0)   # (n, HIDDEN)

    x = layer_norm(x, param("emb_ln_g"), param("emb_ln_b"))

    # ---- additive attention-mask bias (key-side only), (batch, 1, seq) ----
    bias = (1.0 - mask_ref[...].astype(f32)) * f32(-1e9)

    scale = f32(1.0 / math.sqrt(HEAD_DIM))

    for l in range(NUM_LAYERS):                           # static unroll (L=2)
        # ---- fused QKV projection: one MXU pass -> (n, 3*HIDDEN) ----
        qkv = jnp.dot(x, param(f"wqkv_{l}"), preferred_element_type=f32)
        qkv = qkv + param(f"bqkv_{l}")

        # ---- attention: batched over the batch dim; static unroll over heads ----
        ctx_heads = []
        for h in range(NUM_HEADS):
            c0 = h * HEAD_DIM
            q = (qkv[:, c0:c0 + HEAD_DIM] * scale).reshape(batch, seq, HEAD_DIM)
            k = qkv[:, HIDDEN + c0:HIDDEN + c0 + HEAD_DIM].reshape(batch, seq, HEAD_DIM)
            v = qkv[:, 2 * HIDDEN + c0:2 * HIDDEN + c0 + HEAD_DIM].reshape(batch, seq, HEAD_DIM)

            s = jnp.einsum("bqd,bkd->bqk", q, k, preferred_element_type=f32)
            s = s + bias                                   # (batch, seq, seq)
            s = s - jnp.max(s, axis=-1, keepdims=True)
            p = jnp.exp(s)
            p = p / jnp.sum(p, axis=-1, keepdims=True)     # exact divide
            ctx_h = jnp.einsum("bqk,bkd->bqd", p, v, preferred_element_type=f32)
            ctx_heads.append(ctx_h.reshape(n, HEAD_DIM))
        ctx = jnp.concatenate(ctx_heads, axis=-1)          # (n, HIDDEN)

        # ---- output projection + residual + LN ----
        attn = jnp.dot(ctx, param(f"wo_{l}"), preferred_element_type=f32)
        attn = attn + param(f"bo_{l}")
        x = layer_norm(x + attn, param(f"ln1_g_{l}"), param(f"ln1_b_{l}"))

        # ---- feed-forward + residual + LN ----
        hdn = jnp.dot(x, param(f"w1_{l}"), preferred_element_type=f32)
        hdn = gelu(hdn + param(f"b1_{l}"))
        ffn = jnp.dot(hdn, param(f"w2_{l}"), preferred_element_type=f32)
        ffn = ffn + param(f"b2_{l}")
        x = layer_norm(x + ffn, param(f"ln2_g_{l}"), param(f"ln2_b_{l}"))

    # ---- pooler (CLS token of each example) + classification head ----
    cls = jnp.concatenate(
        [x[b * seq:b * seq + 1, :] for b in range(batch)], axis=0)  # (batch, HIDDEN)
    pooled = jnp.tanh(
        jnp.dot(cls, param("wp"), preferred_element_type=f32) + param("bp"))
    logits = jnp.dot(pooled, param("wfc"), preferred_element_type=f32)
    logits = logits + param("bfc")
    out_ref[...] = logits.astype(out_ref.dtype)


# ---------------- parameter init (deterministic, packed slab) ----------------
def init_params(key):
    def nrm(k, shape, std=0.02):
        return (std * jax.random.normal(k, shape)).astype(jnp.float32)

    keys = iter(jax.random.split(key, 64))
    vals = {
        "word_emb": nrm(next(keys), (VOCAB, HIDDEN)),
        "pos_emb": nrm(next(keys), (MAX_POS, HIDDEN)),
        "type_emb": nrm(next(keys), (TYPE_VOCAB, HIDDEN)),
        "emb_ln_g": jnp.ones((1, HIDDEN), jnp.float32),
        "emb_ln_b": jnp.zeros((1, HIDDEN), jnp.float32),
        "wp": nrm(next(keys), (HIDDEN, HIDDEN)),
        "bp": jnp.zeros((1, HIDDEN), jnp.float32),
        "wfc": nrm(next(keys), (HIDDEN, NUM_CLASSES)),
        "bfc": jnp.zeros((1, NUM_CLASSES), jnp.float32),
    }
    for l in range(NUM_LAYERS):
        vals[f"wqkv_{l}"] = nrm(next(keys), (HIDDEN, 3 * HIDDEN))
        vals[f"bqkv_{l}"] = jnp.zeros((1, 3 * HIDDEN), jnp.float32)
        vals[f"wo_{l}"] = nrm(next(keys), (HIDDEN, HIDDEN))
        vals[f"bo_{l}"] = jnp.zeros((1, HIDDEN), jnp.float32)
        vals[f"ln1_g_{l}"] = jnp.ones((1, HIDDEN), jnp.float32)
        vals[f"ln1_b_{l}"] = jnp.zeros((1, HIDDEN), jnp.float32)
        vals[f"w1_{l}"] = nrm(next(keys), (HIDDEN, INTERMEDIATE))
        vals[f"b1_{l}"] = jnp.zeros((1, INTERMEDIATE), jnp.float32)
        vals[f"w2_{l}"] = nrm(next(keys), (INTERMEDIATE, HIDDEN))
        vals[f"b2_{l}"] = jnp.zeros((1, HIDDEN), jnp.float32)
        vals[f"ln2_g_{l}"] = jnp.ones((1, HIDDEN), jnp.float32)
        vals[f"ln2_b_{l}"] = jnp.zeros((1, HIDDEN), jnp.float32)

    slab = jnp.zeros((SLAB_ROWS, SLAB_COLS), jnp.float32)
    for name, (off, rows, cols) in PARAM_LAYOUT.items():
        slab = slab.at[off:off + rows, :cols].set(vals[name])
    return slab


# ---------------- forward (BertModel + pooler + fc), one pallas_call ----------------
@jax.jit
def bert_softmax_forward(param_slab, token_ids, token_type_ids, attention_mask):
    B, S = token_ids.shape
    kernel = functools.partial(_bert_kernel, batch=B, seq=S)
    return pl.pallas_call(
        kernel,
        out_shape=jax.ShapeDtypeStruct((B, NUM_CLASSES), jnp.float32),
        in_specs=[_VMEM] * 4,
        out_specs=_VMEM,
    )(
        token_ids.reshape(B * S, 1).astype(jnp.int32),
        token_type_ids.reshape(B * S, 1).astype(jnp.int32),
        attention_mask.reshape(B, 1, S).astype(jnp.int32),
        param_slab,
    )


if __name__ == "__main__":
    key = jax.random.PRNGKey(0)
    pkey, k1, k2 = jax.random.split(key, 3)

    param_slab = init_params(pkey)

    B, S = 2, 8
    token_ids = jax.random.randint(k1, (B, S), 0, VOCAB, dtype=jnp.int32)
    token_type_ids = jax.random.randint(k2, (B, S), 0, TYPE_VOCAB, dtype=jnp.int32)
    # mask: first sequence fully valid, second has trailing padding
    attention_mask = jnp.array(
        [[1] * S, [1] * (S - 3) + [0] * 3], dtype=jnp.int32
    )

    logits = bert_softmax_forward(param_slab, token_ids, token_type_ids, attention_mask)
    jax.block_until_ready(logits)
    assert logits.shape == (B, NUM_CLASSES), logits.shape
    print("KERNEL_OK")
</pallas_src>

<mosaic_0001>
module attributes {stable_mosaic.version = 11 : i64} {
  func.func @_bert_kernel(%arg0: memref<16x1xi32, #tpu.memory_space<vmem>>, %arg1: memref<16x1xi32, #tpu.memory_space<vmem>>, %arg2: memref<2x1x8xi32, #tpu.memory_space<vmem>>, %arg3: memref<672x128xf32, #tpu.memory_space<vmem>>, %arg4: memref<2x4xf32, #tpu.memory_space<vmem>>) attributes {dimension_semantics = [], scalar_prefetch = 0 : i64, scratch_operands = 0 : i64, tpu.core_type = #tpu.core_type<tc>} {
    %c0 = arith.constant 0 : index
    %c0_0 = arith.constant 0 : index
    %0 = vector.load %arg0[%c0, %c0_0] : memref<16x1xi32, #tpu.memory_space<vmem>>, vector<16x1xi32>
    %c0_1 = arith.constant 0 : index
    %c0_2 = arith.constant 0 : index
    %1 = vector.load %arg1[%c0_1, %c0_2] : memref<16x1xi32, #tpu.memory_space<vmem>>, vector<16x1xi32>
    %2 = tpu.iota {dimensions = array<i32: 1>} : vector<16x100xi32>
    %3 = vector.broadcast %0 : vector<16x1xi32> to vector<16x100xi32>
    %4 = arith.cmpi eq, %2, %3 : vector<16x100xi32>
    %5 = arith.extui %4 : vector<16x100xi1> to vector<16x100xi32>
    %6 = arith.sitofp %5 : vector<16x100xi32> to vector<16x100xf32>
    %c0_3 = arith.constant 0 : index
    %c0_4 = arith.constant 0 : index
    %7 = vector.load %arg3[%c0_3, %c0_4] : memref<672x128xf32, #tpu.memory_space<vmem>>, vector<100x32xf32>
    %cst = arith.constant dense<0.000000e+00> : vector<16x32xf32>
    %8 = tpu.matmul %6, %7, %cst {dimension_numbers = #tpu.dot_dimension_numbers<[1], [0], [0], [1], [0, 0, 1, 1], [], []>} : vector<16x100xf32>, vector<100x32xf32>, vector<16x32xf32> -> vector<16x32xf32>
    %9 = tpu.iota {dimensions = array<i32: 1>} : vector<16x2xi32>
    %10 = vector.broadcast %1 : vector<16x1xi32> to vector<16x2xi32>
    %11 = arith.cmpi eq, %9, %10 : vector<16x2xi32>
    %12 = arith.extui %11 : vector<16x2xi1> to vector<16x2xi32>
    %13 = arith.sitofp %12 : vector<16x2xi32> to vector<16x2xf32>
    %c120 = arith.constant 120 : index
    %c0_5 = arith.constant 0 : index
    %14 = vector.load %arg3[%c120, %c0_5] : memref<672x128xf32, #tpu.memory_space<vmem>>, vector<2x32xf32>
    %cst_6 = arith.constant dense<0.000000e+00> : vector<16x32xf32>
    %15 = tpu.matmul %13, %14, %cst_6 {dimension_numbers = #tpu.dot_dimension_numbers<[1], [0], [0], [1], [0, 0, 1, 1], [], []>} : vector<16x2xf32>, vector<2x32xf32>, vector<16x32xf32> -> vector<16x32xf32>
    %16 = arith.addf %8, %15 : vector<16x32xf32>
    %c104 = arith.constant 104 : index
    %c0_7 = arith.constant 0 : index
    %17 = vector.load %arg3[%c104, %c0_7] : memref<672x128xf32, #tpu.memory_space<vmem>>, vector<8x32xf32>
    %18 = tpu.concatenate %17, %17 in 0 : vector<8x32xf32>, vector<8x32xf32> -> vector<16x32xf32>
    %19 = arith.addf %16, %18 : vector<16x32xf32>
    %c128 = arith.constant 128 : index
    %c0_8 = arith.constant 0 : index
    %20 = vector.load %arg3[%c128, %c0_8] : memref<672x128xf32, #tpu.memory_space<vmem>>, vector<1x32xf32>
    %c136 = arith.constant 136 : index
    %c0_9 = arith.constant 0 : index
    %21 = vector.load %arg3[%c136, %c0_9] : memref<672x128xf32, #tpu.memory_space<vmem>>, vector<1x32xf32>
    %cst_10 = arith.constant dense<0.000000e+00> : vector<16xf32>
    %22 = vector.multi_reduction <add>, %19, %cst_10 [1] : vector<16x32xf32> to vector<16xf32>
    %23 = vector.shape_cast %22 : vector<16xf32> to vector<16x1xf32>
    %cst_11 = arith.constant 3.200000e+01 : f32
    %24 = vector.broadcast %cst_11 : f32 to vector<16x1xf32>
    %25 = arith.divf %23, %24 : vector<16x1xf32>
    %26 = vector.broadcast %25 : vector<16x1xf32> to vector<16x32xf32>
    %27 = arith.subf %19, %26 : vector<16x32xf32>
    %28 = arith.mulf %27, %27 : vector<16x32xf32>
    %cst_12 = arith.constant dense<0.000000e+00> : vector<16xf32>
    %29 = vector.multi_reduction <add>, %28, %cst_12 [1] : vector<16x32xf32> to vector<16xf32>
    %30 = vector.shape_cast %29 : vector<16xf32> to vector<16x1xf32>
    %cst_13 = arith.constant 3.200000e+01 : f32
    %31 = vector.broadcast %cst_13 : f32 to vector<16x1xf32>
    %32 = arith.divf %30, %31 : vector<16x1xf32>
    %33 = vector.broadcast %25 : vector<16x1xf32> to vector<16x32xf32>
    %34 = arith.subf %19, %33 : vector<16x32xf32>
    %cst_14 = arith.constant 9.99999996E-13 : f32
    %35 = vector.broadcast %cst_14 : f32 to vector<16x1xf32>
    %36 = arith.addf %32, %35 : vector<16x1xf32>
    %37 = math.rsqrt %36 : vector<16x1xf32>
    %38 = vector.broadcast %37 : vector<16x1xf32> to vector<16x32xf32>
    %39 = arith.mulf %34, %38 : vector<16x32xf32>
    %40 = vector.broadcast %20 : vector<1x32xf32> to vector<16x32xf32>
    %41 = arith.mulf %39, %40 : vector<16x32xf32>
    %42 = vector.broadcast %21 : vector<1x32xf32> to vector<16x32xf32>
    %43 = arith.addf %41, %42 : vector<16x32xf32>
    %c0_15 = arith.constant 0 : index
    %c0_16 = arith.constant 0 : index
    %c0_17 = arith.constant 0 : index
    %44 = vector.load %arg2[%c0_15, %c0_16, %c0_17] : memref<2x1x8xi32, #tpu.memory_space<vmem>>, vector<2x1x8xi32>
    %45 = arith.sitofp %44 : vector<2x1x8xi32> to vector<2x1x8xf32>
    %cst_18 = arith.constant 1.000000e+00 : f32
    %46 = vector.broadcast %cst_18 : f32 to vector<2x1x8xf32>
    %47 = arith.subf %46, %45 : vector<2x1x8xf32>
    %cst_19 = arith.constant -1.000000e+09 : f32
    %48 = vector.broadcast %cst_19 : f32 to vector<2x1x8xf32>
    %49 = arith.mulf %47, %48 : vector<2x1x8xf32>
    %c144 = arith.constant 144 : index
    %c0_20 = arith.constant 0 : index
    %50 = vector.load %arg3[%c144, %c0_20] : memref<672x128xf32, #tpu.memory_space<vmem>>, vector<32x96xf32>
    %cst_21 = arith.constant dense<0.000000e+00> : vector<16x96xf32>
    %51 = tpu.matmul %43, %50, %cst_21 {dimension_numbers = #tpu.dot_dimension_numbers<[1], [0], [0], [1], [0, 0, 1, 1], [], []>} : vector<16x32xf32>, vector<32x96xf32>, vector<16x96xf32> -> vector<16x96xf32>
    %c176 = arith.constant 176 : index
    %c0_22 = arith.constant 0 : index
    %52 = vector.load %arg3[%c176, %c0_22] : memref<672x128xf32, #tpu.memory_space<vmem>>, vector<1x96xf32>
    %53 = vector.broadcast %52 : vector<1x96xf32> to vector<16x96xf32>
    %54 = arith.addf %51, %53 : vector<16x96xf32>
    %55 = vector.extract_strided_slice %54 {offsets = [0, 0], sizes = [16, 16], strides = [1, 1]} : vector<16x96xf32> to vector<16x16xf32>
    %cst_23 = arith.constant 2.500000e-01 : f32
    %56 = vector.broadcast %cst_23 : f32 to vector<16x16xf32>
    %57 = arith.mulf %55, %56 : vector<16x16xf32>
    %58 = vector.shape_cast %57 : vector<16x16xf32> to vector<2x8x16xf32>
    %59 = vector.extract_strided_slice %54 {offsets = [0, 32], sizes = [16, 16], strides = [1, 1]} : vector<16x96xf32> to vector<16x16xf32>
    %60 = vector.shape_cast %59 : vector<16x16xf32> to vector<2x8x16xf32>
    %61 = vector.extract_strided_slice %54 {offsets = [0, 64], sizes = [16, 16], strides = [1, 1]} : vector<16x96xf32> to vector<16x16xf32>
    %62 = vector.shape_cast %61 : vector<16x16xf32> to vector<2x8x16xf32>
    "tpu.trace_start"() <{level = 10 : i32, message = "bqd,bkd->bqk"}> : () -> ()
    %cst_24 = arith.constant dense<0.000000e+00> : vector<2x8x8xf32>
    %63 = tpu.matmul %58, %60, %cst_24 {dimension_numbers = #tpu.dot_dimension_numbers<[2], [2], [1], [1], [0, 0, 0, 1, 1, 1], [0], [0]>} : vector<2x8x16xf32>, vector<2x8x16xf32>, vector<2x8x8xf32> -> vector<2x8x8xf32>
    "tpu.trace_stop"() : () -> ()
    %64 = vector.broadcast %49 : vector<2x1x8xf32> to vector<2x8x8xf32>
    %65 = arith.addf %63, %64 : vector<2x8x8xf32>
    %cst_25 = arith.constant dense<0xFF800000> : vector<2x8xf32>
    %66 = vector.multi_reduction <maximumf>, %65, %cst_25 [2] : vector<2x8x8xf32> to vector<2x8xf32>
    %67 = vector.shape_cast %66 : vector<2x8xf32> to vector<2x8x1xf32>
    %68 = vector.broadcast %67 : vector<2x8x1xf32> to vector<2x8x8xf32>
    %69 = arith.subf %65, %68 : vector<2x8x8xf32>
    %70 = math.exp %69 : vector<2x8x8xf32>
    %cst_26 = arith.constant dense<0.000000e+00> : vector<2x8xf32>
    %71 = vector.multi_reduction <add>, %70, %cst_26 [2] : vector<2x8x8xf32> to vector<2x8xf32>
    %72 = vector.shape_cast %71 : vector<2x8xf32> to vector<2x8x1xf32>
    %73 = vector.broadcast %72 : vector<2x8x1xf32> to vector<2x8x8xf32>
    %74 = arith.divf %70, %73 : vector<2x8x8xf32>
    "tpu.trace_start"() <{level = 10 : i32, message = "bqk,bkd->bqd"}> : () -> ()
    %cst_27 = arith.constant dense<0.000000e+00> : vector<2x8x16xf32>
    %75 = tpu.matmul %74, %62, %cst_27 {dimension_numbers = #tpu.dot_dimension_numbers<[2], [1], [1], [2], [0, 0, 0, 1, 1, 2], [0], [0]>} : vector<2x8x8xf32>, vector<2x8x16xf32>, vector<2x8x16xf32> -> vector<2x8x16xf32>
    "tpu.trace_stop"() : () -> ()
    %76 = vector.shape_cast %75 : vector<2x8x16xf32> to vector<16x16xf32>
    %77 = vector.extract_strided_slice %54 {offsets = [0, 16], sizes = [16, 16], strides = [1, 1]} : vector<16x96xf32> to vector<16x16xf32>
    %cst_28 = arith.constant 2.500000e-01 : f32
    %78 = vector.broadcast %cst_28 : f32 to vector<16x16xf32>
    %79 = arith.mulf %77, %78 : vector<16x16xf32>
    %80 = vector.shape_cast %79 : vector<16x16xf32> to vector<2x8x16xf32>
    %81 = vector.extract_strided_slice %54 {offsets = [0, 48], sizes = [16, 16], strides = [1, 1]} : vector<16x96xf32> to vector<16x16xf32>
    %82 = vector.shape_cast %81 : vector<16x16xf32> to vector<2x8x16xf32>
    %83 = vector.extract_strided_slice %54 {offsets = [0, 80], sizes = [16, 16], strides = [1, 1]} : vector<16x96xf32> to vector<16x16xf32>
    %84 = vector.shape_cast %83 : vector<16x16xf32> to vector<2x8x16xf32>
    "tpu.trace_start"() <{level = 10 : i32, message = "bqd,bkd->bqk"}> : () -> ()
    %cst_29 = arith.constant dense<0.000000e+00> : vector<2x8x8xf32>
    %85 = tpu.matmul %80, %82, %cst_29 {dimension_numbers = #tpu.dot_dimension_numbers<[2], [2], [1], [1], [0, 0, 0, 1, 1, 1], [0], [0]>} : vector<2x8x16xf32>, vector<2x8x16xf32>, vector<2x8x8xf32> -> vector<2x8x8xf32>
    "tpu.trace_stop"() : () -> ()
    %86 = vector.broadcast %49 : vector<2x1x8xf32> to vector<2x8x8xf32>
    %87 = arith.addf %85, %86 : vector<2x8x8xf32>
    %cst_30 = arith.constant dense<0xFF800000> : vector<2x8xf32>
    %88 = vector.multi_reduction <maximumf>, %87, %cst_30 [2] : vector<2x8x8xf32> to vector<2x8xf32>
    %89 = vector.shape_cast %88 : vector<2x8xf32> to vector<2x8x1xf32>
    %90 = vector.broadcast %89 : vector<2x8x1xf32> to vector<2x8x8xf32>
    %91 = arith.subf %87, %90 : vector<2x8x8xf32>
    %92 = math.exp %91 : vector<2x8x8xf32>
    %cst_31 = arith.constant dense<0.000000e+00> : vector<2x8xf32>
    %93 = vector.multi_reduction <add>, %92, %cst_31 [2] : vector<2x8x8xf32> to vector<2x8xf32>
    %94 = vector.shape_cast %93 : vector<2x8xf32> to vector<2x8x1xf32>
    %95 = vector.broadcast %94 : vector<2x8x1xf32> to vector<2x8x8xf32>
    %96 = arith.divf %92, %95 : vector<2x8x8xf32>
    "tpu.trace_start"() <{level = 10 : i32, message = "bqk,bkd->bqd"}> : () -> ()
    %cst_32 = arith.constant dense<0.000000e+00> : vector<2x8x16xf32>
    %97 = tpu.matmul %96, %84, %cst_32 {dimension_numbers = #tpu.dot_dimension_numbers<[2], [1], [1], [2], [0, 0, 0, 1, 1, 2], [0], [0]>} : vector<2x8x8xf32>, vector<2x8x16xf32>, vector<2x8x16xf32> -> vector<2x8x16xf32>
    "tpu.trace_stop"() : () -> ()
    %98 = vector.shape_cast %97 : vector<2x8x16xf32> to vector<16x16xf32>
    %99 = tpu.concatenate %76, %98 in 1 : vector<16x16xf32>, vector<16x16xf32> -> vector<16x32xf32>
    %c184 = arith.constant 184 : index
    %c0_33 = arith.constant 0 : index
    %100 = vector.load %arg3[%c184, %c0_33] : memref<672x128xf32, #tpu.memory_space<vmem>>, vector<32x32xf32>
    %cst_34 = arith.constant dense<0.000000e+00> : vector<16x32xf32>
    %101 = tpu.matmul %99, %100, %cst_34 {dimension_numbers = #tpu.dot_dimension_numbers<[1], [0], [0], [1], [0, 0, 1, 1], [], []>} : vector<16x32xf32>, vector<32x32xf32>, vector<16x32xf32> -> vector<16x32xf32>
    %c216 = arith.constant 216 : index
    %c0_35 = arith.constant 0 : index
    %102 = vector.load %arg3[%c216, %c0_35] : memref<672x128xf32, #tpu.memory_space<vmem>>, vector<1x32xf32>
    %103 = vector.broadcast %102 : vector<1x32xf32> to vector<16x32xf32>
    %104 = arith.addf %101, %103 : vector<16x32xf32>
    %105 = arith.addf %43, %104 : vector<16x32xf32>
    %c224 = arith.constant 224 : index
    %c0_36 = arith.constant 0 : index
    %106 = vector.load %arg3[%c224, %c0_36] : memref<672x128xf32, #tpu.memory_space<vmem>>, vector<1x32xf32>
    %c232 = arith.constant 232 : index
    %c0_37 = arith.constant 0 : index
    %107 = vector.load %arg3[%c232, %c0_37] : memref<672x128xf32, #tpu.memory_space<vmem>>, vector<1x32xf32>
    %cst_38 = arith.constant dense<0.000000e+00> : vector<16xf32>
    %108 = vector.multi_reduction <add>, %105, %cst_38 [1] : vector<16x32xf32> to vector<16xf32>
    %109 = vector.shape_cast %108 : vector<16xf32> to vector<16x1xf32>
    %cst_39 = arith.constant 3.200000e+01 : f32
    %110 = vector.broadcast %cst_39 : f32 to vector<16x1xf32>
    %111 = arith.divf %109, %110 : vector<16x1xf32>
    %112 = vector.broadcast %111 : vector<16x1xf32> to vector<16x32xf32>
    %113 = arith.subf %105, %112 : vector<16x32xf32>
    %114 = arith.mulf %113, %113 : vector<16x32xf32>
    %cst_40 = arith.constant dense<0.000000e+00> : vector<16xf32>
    %115 = vector.multi_reduction <add>, %114, %cst_40 [1] : vector<16x32xf32> to vector<16xf32>
    %116 = vector.shape_cast %115 : vector<16xf32> to vector<16x1xf32>
    %cst_41 = arith.constant 3.200000e+01 : f32
    %117 = vector.broadcast %cst_41 : f32 to vector<16x1xf32>
    %118 = arith.divf %116, %117 : vector<16x1xf32>
    %119 = vector.broadcast %111 : vector<16x1xf32> to vector<16x32xf32>
    %120 = arith.subf %105, %119 : vector<16x32xf32>
    %cst_42 = arith.constant 9.99999996E-13 : f32
    %121 = vector.broadcast %cst_42 : f32 to vector<16x1xf32>
    %122 = arith.addf %118, %121 : vector<16x1xf32>
    %123 = math.rsqrt %122 : vector<16x1xf32>
    %124 = vector.broadcast %123 : vector<16x1xf32> to vector<16x32xf32>
    %125 = arith.mulf %120, %124 : vector<16x32xf32>
    %126 = vector.broadcast %106 : vector<1x32xf32> to vector<16x32xf32>
    %127 = arith.mulf %125, %126 : vector<16x32xf32>
    %128 = vector.broadcast %107 : vector<1x32xf32> to vector<16x32xf32>
    %129 = arith.addf %127, %128 : vector<16x32xf32>
    %c240 = arith.constant 240 : index
    %c0_43 = arith.constant 0 : index
    %130 = vector.load %arg3[%c240, %c0_43] : memref<672x128xf32, #tpu.memory_space<vmem>>, vector<32x64xf32>
    %cst_44 = arith.constant dense<0.000000e+00> : vector<16x64xf32>
    %131 = tpu.matmul %129, %130, %cst_44 {dimension_numbers = #tpu.dot_dimension_numbers<[1], [0], [0], [1], [0, 0, 1, 1], [], []>} : vector<16x32xf32>, vector<32x64xf32>, vector<16x64xf32> -> vector<16x64xf32>
    %c272 = arith.constant 272 : index
    %c0_45 = arith.constant 0 : index
    %132 = vector.load %arg3[%c272, %c0_45] : memref<672x128xf32, #tpu.memory_space<vmem>>, vector<1x64xf32>
    %133 = vector.broadcast %132 : vector<1x64xf32> to vector<16x64xf32>
    %134 = arith.addf %131, %133 : vector<16x64xf32>
    %cst_46 = arith.constant 5.000000e-01 : f32
    %135 = vector.broadcast %cst_46 : f32 to vector<16x64xf32>
    %136 = arith.mulf %135, %134 : vector<16x64xf32>
    %137 = arith.mulf %134, %134 : vector<16x64xf32>
    %138 = arith.mulf %134, %137 : vector<16x64xf32>
    %cst_47 = arith.constant 4.471500e-02 : f32
    %139 = vector.broadcast %cst_47 : f32 to vector<16x64xf32>
    %140 = arith.mulf %139, %138 : vector<16x64xf32>
    %141 = arith.addf %134, %140 : vector<16x64xf32>
    %cst_48 = arith.constant 0.797884583 : f32
    %142 = vector.broadcast %cst_48 : f32 to vector<16x64xf32>
    %143 = arith.mulf %142, %141 : vector<16x64xf32>
    %144 = math.tanh %143 : vector<16x64xf32>
    %cst_49 = arith.constant 1.000000e+00 : f32
    %145 = vector.broadcast %cst_49 : f32 to vector<16x64xf32>
    %146 = arith.addf %145, %144 : vector<16x64xf32>
    %147 = arith.mulf %136, %146 : vector<16x64xf32>
    %c280 = arith.constant 280 : index
    %c0_50 = arith.constant 0 : index
    %148 = vector.load %arg3[%c280, %c0_50] : memref<672x128xf32, #tpu.memory_space<vmem>>, vector<64x32xf32>
    %cst_51 = arith.constant dense<0.000000e+00> : vector<16x32xf32>
    %149 = tpu.matmul %147, %148, %cst_51 {dimension_numbers = #tpu.dot_dimension_numbers<[1], [0], [0], [1], [0, 0, 1, 1], [], []>} : vector<16x64xf32>, vector<64x32xf32>, vector<16x32xf32> -> vector<16x32xf32>
    %c344 = arith.constant 344 : index
    %c0_52 = arith.constant 0 : index
    %150 = vector.load %arg3[%c344, %c0_52] : memref<672x128xf32, #tpu.memory_space<vmem>>, vector<1x32xf32>
    %151 = vector.broadcast %150 : vector<1x32xf32> to vector<16x32xf32>
    %152 = arith.addf %149, %151 : vector<16x32xf32>
    %153 = arith.addf %129, %152 : vector<16x32xf32>
    %c352 = arith.constant 352 : index
    %c0_53 = arith.constant 0 : index
    %154 = vector.load %arg3[%c352, %c0_53] : memref<672x128xf32, #tpu.memory_space<vmem>>, vector<1x32xf32>
    %c360 = arith.constant 360 : index
    %c0_54 = arith.constant 0 : index
    %155 = vector.load %arg3[%c360, %c0_54] : memref<672x128xf32, #tpu.memory_space<vmem>>, vector<1x32xf32>
    %cst_55 = arith.constant dense<0.000000e+00> : vector<16xf32>
    %156 = vector.multi_reduction <add>, %153, %cst_55 [1] : vector<16x32xf32> to vector<16xf32>
    %157 = vector.shape_cast %156 : vector<16xf32> to vector<16x1xf32>
    %cst_56 = arith.constant 3.200000e+01 : f32
    %158 = vector.broadcast %cst_56 : f32 to vector<16x1xf32>
    %159 = arith.divf %157, %158 : vector<16x1xf32>
    %160 = vector.broadcast %159 : vector<16x1xf32> to vector<16x32xf32>
    %161 = arith.subf %153, %160 : vector<16x32xf32>
    %162 = arith.mulf %161, %161 : vector<16x32xf32>
    %cst_57 = arith.constant dense<0.000000e+00> : vector<16xf32>
    %163 = vector.multi_reduction <add>, %162, %cst_57 [1] : vector<16x32xf32> to vector<16xf32>
    %164 = vector.shape_cast %163 : vector<16xf32> to vector<16x1xf32>
    %cst_58 = arith.constant 3.200000e+01 : f32
    %165 = vector.broadcast %cst_58 : f32 to vector<16x1xf32>
    %166 = arith.divf %164, %165 : vector<16x1xf32>
    %167 = vector.broadcast %159 : vector<16x1xf32> to vector<16x32xf32>
    %168 = arith.subf %153, %167 : vector<16x32xf32>
    %cst_59 = arith.constant 9.99999996E-13 : f32
    %169 = vector.broadcast %cst_59 : f32 to vector<16x1xf32>
    %170 = arith.addf %166, %169 : vector<16x1xf32>
    %171 = math.rsqrt %170 : vector<16x1xf32>
    %172 = vector.broadcast %171 : vector<16x1xf32> to vector<16x32xf32>
    %173 = arith.mulf %168, %172 : vector<16x32xf32>
    %174 = vector.broadcast %154 : vector<1x32xf32> to vector<16x32xf32>
    %175 = arith.mulf %173, %174 : vector<16x32xf32>
    %176 = vector.broadcast %155 : vector<1x32xf32> to vector<16x32xf32>
    %177 = arith.addf %175, %176 : vector<16x32xf32>
    %c368 = arith.constant 368 : index
    %c0_60 = arith.constant 0 : index
    %178 = vector.load %arg3[%c368, %c0_60] : memref<672x128xf32, #tpu.memory_space<vmem>>, vector<32x96xf32>
    %cst_61 = arith.constant dense<0.000000e+00> : vector<16x96xf32>
    %179 = tpu.matmul %177, %178, %cst_61 {dimension_numbers = #tpu.dot_dimension_numbers<[1], [0], [0], [1], [0, 0, 1, 1], [], []>} : vector<16x32xf32>, vector<32x96xf32>, vector<16x96xf32> -> vector<16x96xf32>
    %c400 = arith.constant 400 : index
    %c0_62 = arith.constant 0 : index
    %180 = vector.load %arg3[%c400, %c0_62] : memref<672x128xf32, #tpu.memory_space<vmem>>, vector<1x96xf32>
    %181 = vector.broadcast %180 : vector<1x96xf32> to vector<16x96xf32>
    %182 = arith.addf %179, %181 : vector<16x96xf32>
    %183 = vector.extract_strided_slice %182 {offsets = [0, 0], sizes = [16, 16], strides = [1, 1]} : vector<16x96xf32> to vector<16x16xf32>
    %cst_63 = arith.constant 2.500000e-01 : f32
    %184 = vector.broadcast %cst_63 : f32 to vector<16x16xf32>
    %185 = arith.mulf %183, %184 : vector<16x16xf32>
    %186 = vector.shape_cast %185 : vector<16x16xf32> to vector<2x8x16xf32>
    %187 = vector.extract_strided_slice %182 {offsets = [0, 32], sizes = [16, 16], strides = [1, 1]} : vector<16x96xf32> to vector<16x16xf32>
    %188 = vector.shape_cast %187 : vector<16x16xf32> to vector<2x8x16xf32>
    %189 = vector.extract_strided_slice %182 {offsets = [0, 64], sizes = [16, 16], strides = [1, 1]} : vector<16x96xf32> to vector<16x16xf32>
    %190 = vector.shape_cast %189 : vector<16x16xf32> to vector<2x8x16xf32>
    "tpu.trace_start"() <{level = 10 : i32, message = "bqd,bkd->bqk"}> : () -> ()
    %cst_64 = arith.constant dense<0.000000e+00> : vector<2x8x8xf32>
    %191 = tpu.matmul %186, %188, %cst_64 {dimension_numbers = #tpu.dot_dimension_numbers<[2], [2], [1], [1], [0, 0, 0, 1, 1, 1], [0], [0]>} : vector<2x8x16xf32>, vector<2x8x16xf32>, vector<2x8x8xf32> -> vector<2x8x8xf32>
    "tpu.trace_stop"() : () -> ()
    %192 = vector.broadcast %49 : vector<2x1x8xf32> to vector<2x8x8xf32>
    %193 = arith.addf %191, %192 : vector<2x8x8xf32>
    %cst_65 = arith.constant dense<0xFF800000> : vector<2x8xf32>
    %194 = vector.multi_reduction <maximumf>, %193, %cst_65 [2] : vector<2x8x8xf32> to vector<2x8xf32>
    %195 = vector.shape_cast %194 : vector<2x8xf32> to vector<2x8x1xf32>
    %196 = vector.broadcast %195 : vector<2x8x1xf32> to vector<2x8x8xf32>
    %197 = arith.subf %193, %196 : vector<2x8x8xf32>
    %198 = math.exp %197 : vector<2x8x8xf32>
    %cst_66 = arith.constant dense<0.000000e+00> : vector<2x8xf32>
    %199 = vector.multi_reduction <add>, %198, %cst_66 [2] : vector<2x8x8xf32> to vector<2x8xf32>
    %200 = vector.shape_cast %199 : vector<2x8xf32> to vector<2x8x1xf32>
    %201 = vector.broadcast %200 : vector<2x8x1xf32> to vector<2x8x8xf32>
    %202 = arith.divf %198, %201 : vector<2x8x8xf32>
    "tpu.trace_start"() <{level = 10 : i32, message = "bqk,bkd->bqd"}> : () -> ()
    %cst_67 = arith.constant dense<0.000000e+00> : vector<2x8x16xf32>
    %203 = tpu.matmul %202, %190, %cst_67 {dimension_numbers = #tpu.dot_dimension_numbers<[2], [1], [1], [2], [0, 0, 0, 1, 1, 2], [0], [0]>} : vector<2x8x8xf32>, vector<2x8x16xf32>, vector<2x8x16xf32> -> vector<2x8x16xf32>
    "tpu.trace_stop"() : () -> ()
    %204 = vector.shape_cast %203 : vector<2x8x16xf32> to vector<16x16xf32>
    %205 = vector.extract_strided_slice %182 {offsets = [0, 16], sizes = [16, 16], strides = [1, 1]} : vector<16x96xf32> to vector<16x16xf32>
    %cst_68 = arith.constant 2.500000e-01 : f32
    %206 = vector.broadcast %cst_68 : f32 to vector<16x16xf32>
    %207 = arith.mulf %205, %206 : vector<16x16xf32>
    %208 = vector.shape_cast %207 : vector<16x16xf32> to vector<2x8x16xf32>
    %209 = vector.extract_strided_slice %182 {offsets = [0, 48], sizes = [16, 16], strides = [1, 1]} : vector<16x96xf32> to vector<16x16xf32>
    %210 = vector.shape_cast %209 : vector<16x16xf32> to vector<2x8x16xf32>
    %211 = vector.extract_strided_slice %182 {offsets = [0, 80], sizes = [16, 16], strides = [1, 1]} : vector<16x96xf32> to vector<16x16xf32>
    %212 = vector.shape_cast %211 : vector<16x16xf32> to vector<2x8x16xf32>
    "tpu.trace_start"() <{level = 10 : i32, message = "bqd,bkd->bqk"}> : () -> ()
    %cst_69 = arith.constant dense<0.000000e+00> : vector<2x8x8xf32>
    %213 = tpu.matmul %208, %210, %cst_69 {dimension_numbers = #tpu.dot_dimension_numbers<[2], [2], [1], [1], [0, 0, 0, 1, 1, 1], [0], [0]>} : vector<2x8x16xf32>, vector<2x8x16xf32>, vector<2x8x8xf32> -> vector<2x8x8xf32>
    "tpu.trace_stop"() : () -> ()
    %214 = vector.broadcast %49 : vector<2x1x8xf32> to vector<2x8x8xf32>
    %215 = arith.addf %213, %214 : vector<2x8x8xf32>
    %cst_70 = arith.constant dense<0xFF800000> : vector<2x8xf32>
    %216 = vector.multi_reduction <maximumf>, %215, %cst_70 [2] : vector<2x8x8xf32> to vector<2x8xf32>
    %217 = vector.shape_cast %216 : vector<2x8xf32> to vector<2x8x1xf32>
    %218 = vector.broadcast %217 : vector<2x8x1xf32> to vector<2x8x8xf32>
    %219 = arith.subf %215, %218 : vector<2x8x8xf32>
    %220 = math.exp %219 : vector<2x8x8xf32>
    %cst_71 = arith.constant dense<0.000000e+00> : vector<2x8xf32>
    %221 = vector.multi_reduction <add>, %220, %cst_71 [2] : vector<2x8x8xf32> to vector<2x8xf32>
    %222 = vector.shape_cast %221 : vector<2x8xf32> to vector<2x8x1xf32>
    %223 = vector.broadcast %222 : vector<2x8x1xf32> to vector<2x8x8xf32>
    %224 = arith.divf %220, %223 : vector<2x8x8xf32>
    "tpu.trace_start"() <{level = 10 : i32, message = "bqk,bkd->bqd"}> : () -> ()
    %cst_72 = arith.constant dense<0.000000e+00> : vector<2x8x16xf32>
    %225 = tpu.matmul %224, %212, %cst_72 {dimension_numbers = #tpu.dot_dimension_numbers<[2], [1], [1], [2], [0, 0, 0, 1, 1, 2], [0], [0]>} : vector<2x8x8xf32>, vector<2x8x16xf32>, vector<2x8x16xf32> -> vector<2x8x16xf32>
    "tpu.trace_stop"() : () -> ()
    %226 = vector.shape_cast %225 : vector<2x8x16xf32> to vector<16x16xf32>
    %227 = tpu.concatenate %204, %226 in 1 : vector<16x16xf32>, vector<16x16xf32> -> vector<16x32xf32>
    %c408 = arith.constant 408 : index
    %c0_73 = arith.constant 0 : index
    %228 = vector.load %arg3[%c408, %c0_73] : memref<672x128xf32, #tpu.memory_space<vmem>>, vector<32x32xf32>
    %cst_74 = arith.constant dense<0.000000e+00> : vector<16x32xf32>
    %229 = tpu.matmul %227, %228, %cst_74 {dimension_numbers = #tpu.dot_dimension_numbers<[1], [0], [0], [1], [0, 0, 1, 1], [], []>} : vector<16x32xf32>, vector<32x32xf32>, vector<16x32xf32> -> vector<16x32xf32>
    %c440 = arith.constant 440 : index
    %c0_75 = arith.constant 0 : index
    %230 = vector.load %arg3[%c440, %c0_75] : memref<672x128xf32, #tpu.memory_space<vmem>>, vector<1x32xf32>
    %231 = vector.broadcast %230 : vector<1x32xf32> to vector<16x32xf32>
    %232 = arith.addf %229, %231 : vector<16x32xf32>
    %233 = arith.addf %177, %232 : vector<16x32xf32>
    %c448 = arith.constant 448 : index
    %c0_76 = arith.constant 0 : index
    %234 = vector.load %arg3[%c448, %c0_76] : memref<672x128xf32, #tpu.memory_space<vmem>>, vector<1x32xf32>
    %c456 = arith.constant 456 : index
    %c0_77 = arith.constant 0 : index
    %235 = vector.load %arg3[%c456, %c0_77] : memref<672x128xf32, #tpu.memory_space<vmem>>, vector<1x32xf32>
    %cst_78 = arith.constant dense<0.000000e+00> : vector<16xf32>
    %236 = vector.multi_reduction <add>, %233, %cst_78 [1] : vector<16x32xf32> to vector<16xf32>
    %237 = vector.shape_cast %236 : vector<16xf32> to vector<16x1xf32>
    %cst_79 = arith.constant 3.200000e+01 : f32
    %238 = vector.broadcast %cst_79 : f32 to vector<16x1xf32>
    %239 = arith.divf %237, %238 : vector<16x1xf32>
    %240 = vector.broadcast %239 : vector<16x1xf32> to vector<16x32xf32>
    %241 = arith.subf %233, %240 : vector<16x32xf32>
    %242 = arith.mulf %241, %241 : vector<16x32xf32>
    %cst_80 = arith.constant dense<0.000000e+00> : vector<16xf32>
    %243 = vector.multi_reduction <add>, %242, %cst_80 [1] : vector<16x32xf32> to vector<16xf32>
    %244 = vector.shape_cast %243 : vector<16xf32> to vector<16x1xf32>
    %cst_81 = arith.constant 3.200000e+01 : f32
    %245 = vector.broadcast %cst_81 : f32 to vector<16x1xf32>
    %246 = arith.divf %244, %245 : vector<16x1xf32>
    %247 = vector.broadcast %239 : vector<16x1xf32> to vector<16x32xf32>
    %248 = arith.subf %233, %247 : vector<16x32xf32>
    %cst_82 = arith.constant 9.99999996E-13 : f32
    %249 = vector.broadcast %cst_82 : f32 to vector<16x1xf32>
    %250 = arith.addf %246, %249 : vector<16x1xf32>
    %251 = math.rsqrt %250 : vector<16x1xf32>
    %252 = vector.broadcast %251 : vector<16x1xf32> to vector<16x32xf32>
    %253 = arith.mulf %248, %252 : vector<16x32xf32>
    %254 = vector.broadcast %234 : vector<1x32xf32> to vector<16x32xf32>
    %255 = arith.mulf %253, %254 : vector<16x32xf32>
    %256 = vector.broadcast %235 : vector<1x32xf32> to vector<16x32xf32>
    %257 = arith.addf %255, %256 : vector<16x32xf32>
    %c464 = arith.constant 464 : index
    %c0_83 = arith.constant 0 : index
    %258 = vector.load %arg3[%c464, %c0_83] : memref<672x128xf32, #tpu.memory_space<vmem>>, vector<32x64xf32>
    %cst_84 = arith.constant dense<0.000000e+00> : vector<16x64xf32>
    %259 = tpu.matmul %257, %258, %cst_84 {dimension_numbers = #tpu.dot_dimension_numbers<[1], [0], [0], [1], [0, 0, 1, 1], [], []>} : vector<16x32xf32>, vector<32x64xf32>, vector<16x64xf32> -> vector<16x64xf32>
    %c496 = arith.constant 496 : index
    %c0_85 = arith.constant 0 : index
    %260 = vector.load %arg3[%c496, %c0_85] : memref<672x128xf32, #tpu.memory_space<vmem>>, vector<1x64xf32>
    %261 = vector.broadcast %260 : vector<1x64xf32> to vector<16x64xf32>
    %262 = arith.addf %259, %261 : vector<16x64xf32>
    %cst_86 = arith.constant 5.000000e-01 : f32
    %263 = vector.broadcast %cst_86 : f32 to vector<16x64xf32>
    %264 = arith.mulf %263, %262 : vector<16x64xf32>
    %265 = arith.mulf %262, %262 : vector<16x64xf32>
    %266 = arith.mulf %262, %265 : vector<16x64xf32>
    %cst_87 = arith.constant 4.471500e-02 : f32
    %267 = vector.broadcast %cst_87 : f32 to vector<16x64xf32>
    %268 = arith.mulf %267, %266 : vector<16x64xf32>
    %269 = arith.addf %262, %268 : vector<16x64xf32>
    %cst_88 = arith.constant 0.797884583 : f32
    %270 = vector.broadcast %cst_88 : f32 to vector<16x64xf32>
    %271 = arith.mulf %270, %269 : vector<16x64xf32>
    %272 = math.tanh %271 : vector<16x64xf32>
    %cst_89 = arith.constant 1.000000e+00 : f32
    %273 = vector.broadcast %cst_89 : f32 to vector<16x64xf32>
    %274 = arith.addf %273, %272 : vector<16x64xf32>
    %275 = arith.mulf %264, %274 : vector<16x64xf32>
    %c504 = arith.constant 504 : index
    %c0_90 = arith.constant 0 : index
    %276 = vector.load %arg3[%c504, %c0_90] : memref<672x128xf32, #tpu.memory_space<vmem>>, vector<64x32xf32>
    %cst_91 = arith.constant dense<0.000000e+00> : vector<16x32xf32>
    %277 = tpu.matmul %275, %276, %cst_91 {dimension_numbers = #tpu.dot_dimension_numbers<[1], [0], [0], [1], [0, 0, 1, 1], [], []>} : vector<16x64xf32>, vector<64x32xf32>, vector<16x32xf32> -> vector<16x32xf32>
    %c568 = arith.constant 568 : index
    %c0_92 = arith.constant 0 : index
    %278 = vector.load %arg3[%c568, %c0_92] : memref<672x128xf32, #tpu.memory_space<vmem>>, vector<1x32xf32>
    %279 = vector.broadcast %278 : vector<1x32xf32> to vector<16x32xf32>
    %280 = arith.addf %277, %279 : vector<16x32xf32>
    %281 = arith.addf %257, %280 : vector<16x32xf32>
    %c576 = arith.constant 576 : index
    %c0_93 = arith.constant 0 : index
    %282 = vector.load %arg3[%c576, %c0_93] : memref<672x128xf32, #tpu.memory_space<vmem>>, vector<1x32xf32>
    %c584 = arith.constant 584 : index
    %c0_94 = arith.constant 0 : index
    %283 = vector.load %arg3[%c584, %c0_94] : memref<672x128xf32, #tpu.memory_space<vmem>>, vector<1x32xf32>
    %cst_95 = arith.constant dense<0.000000e+00> : vector<16xf32>
    %284 = vector.multi_reduction <add>, %281, %cst_95 [1] : vector<16x32xf32> to vector<16xf32>
    %285 = vector.shape_cast %284 : vector<16xf32> to vector<16x1xf32>
    %cst_96 = arith.constant 3.200000e+01 : f32
    %286 = vector.broadcast %cst_96 : f32 to vector<16x1xf32>
    %287 = arith.divf %285, %286 : vector<16x1xf32>
    %288 = vector.broadcast %287 : vector<16x1xf32> to vector<16x32xf32>
    %289 = arith.subf %281, %288 : vector<16x32xf32>
    %290 = arith.mulf %289, %289 : vector<16x32xf32>
    %cst_97 = arith.constant dense<0.000000e+00> : vector<16xf32>
    %291 = vector.multi_reduction <add>, %290, %cst_97 [1] : vector<16x32xf32> to vector<16xf32>
    %292 = vector.shape_cast %291 : vector<16xf32> to vector<16x1xf32>
    %cst_98 = arith.constant 3.200000e+01 : f32
    %293 = vector.broadcast %cst_98 : f32 to vector<16x1xf32>
    %294 = arith.divf %292, %293 : vector<16x1xf32>
    %295 = vector.broadcast %287 : vector<16x1xf32> to vector<16x32xf32>
    %296 = arith.subf %281, %295 : vector<16x32xf32>
    %cst_99 = arith.constant 9.99999996E-13 : f32
    %297 = vector.broadcast %cst_99 : f32 to vector<16x1xf32>
    %298 = arith.addf %294, %297 : vector<16x1xf32>
    %299 = math.rsqrt %298 : vector<16x1xf32>
    %300 = vector.broadcast %299 : vector<16x1xf32> to vector<16x32xf32>
    %301 = arith.mulf %296, %300 : vector<16x32xf32>
    %302 = vector.broadcast %282 : vector<1x32xf32> to vector<16x32xf32>
    %303 = arith.mulf %301, %302 : vector<16x32xf32>
    %304 = vector.broadcast %283 : vector<1x32xf32> to vector<16x32xf32>
    %305 = arith.addf %303, %304 : vector<16x32xf32>
    %306 = vector.extract_strided_slice %305 {offsets = [0, 0], sizes = [1, 32], strides = [1, 1]} : vector<16x32xf32> to vector<1x32xf32>
    %307 = vector.extract_strided_slice %305 {offsets = [8, 0], sizes = [1, 32], strides = [1, 1]} : vector<16x32xf32> to vector<1x32xf32>
    %308 = tpu.concatenate %306, %307 in 0 : vector<1x32xf32>, vector<1x32xf32> -> vector<2x32xf32>
    %c592 = arith.constant 592 : index
    %c0_100 = arith.constant 0 : index
    %309 = vector.load %arg3[%c592, %c0_100] : memref<672x128xf32, #tpu.memory_space<vmem>>, vector<32x32xf32>
    %cst_101 = arith.constant dense<0.000000e+00> : vector<2x32xf32>
    %310 = tpu.matmul %308, %309, %cst_101 {dimension_numbers = #tpu.dot_dimension_numbers<[1], [0], [0], [1], [0, 0, 1, 1], [], []>} : vector<2x32xf32>, vector<32x32xf32>, vector<2x32xf32> -> vector<2x32xf32>
    %c624 = arith.constant 624 : index
    %c0_102 = arith.constant 0 : index
    %311 = vector.load %arg3[%c624, %c0_102] : memref<672x128xf32, #tpu.memory_space<vmem>>, vector<1x32xf32>
    %312 = vector.broadcast %311 : vector<1x32xf32> to vector<2x32xf32>
    %313 = arith.addf %310, %312 : vector<2x32xf32>
    %314 = math.tanh %313 : vector<2x32xf32>
    %c632 = arith.constant 632 : index
    %c0_103 = arith.constant 0 : index
    %315 = vector.load %arg3[%c632, %c0_103] : memref<672x128xf32, #tpu.memory_space<vmem>>, vector<32x4xf32>
    %cst_104 = arith.constant dense<0.000000e+00> : vector<2x4xf32>
    %316 = tpu.matmul %314, %315, %cst_104 {dimension_numbers = #tpu.dot_dimension_numbers<[1], [0], [0], [1], [0, 0, 1, 1], [], []>} : vector<2x32xf32>, vector<32x4xf32>, vector<2x4xf32> -> vector<2x4xf32>
    %c664 = arith.constant 664 : index
    %c0_105 = arith.constant 0 : index
    %317 = vector.load %arg3[%c664, %c0_105] : memref<672x128xf32, #tpu.memory_space<vmem>>, vector<1x4xf32>
    %318 = vector.broadcast %317 : vector<1x4xf32> to vector<2x4xf32>
    %319 = arith.addf %316, %318 : vector<2x4xf32>
    %c0_106 = arith.constant 0 : index
    %c0_107 = arith.constant 0 : index
    %320 = vector.load %arg4[%c0_106, %c0_107] : memref<2x4xf32, #tpu.memory_space<vmem>>, vector<2x4xf32>
    tpu.vector_store %arg4[%c0_106, %c0_107], %319 {strides = array<i32>} : memref<2x4xf32, #tpu.memory_space<vmem>>, vector<2x4xf32>,
    return
  }
}

</mosaic_0001>

<bundles_post_ra>
// kernel: bert_softmax_forward.1
= control target key start
LH: loop header
LB: loop body
LE: loop exit
PB: predicated region body
PF: predicated region fallthrough
CT: control target
= control target key end

     0   :  { %9 = vsyncpa [#allocation3], 0  ;;  %s3632_s0 = inlined_call_operand.vmem [shape: s32[16,1], index: 0, kind: input, shape index: {}]   ;;  %s3633_s1 = inlined_call_operand.vmem [shape: s32[16,1], index: 1, kind: input, shape index: {}]   ;;  %s3634_s2 = inlined_call_operand.vmem [shape: s32[2,1,8], index: 2, kind: input, shape index: {}]   ;;  %s3635_s3 = inlined_call_operand.hbm [shape: f32[672,128], index: 3, kind: input, shape index: {}]   ;;  %s3636_s4 = inlined_call_operand.hbm [shape: f32[2,4], index: 4, kind: output, shape index: {}]  }
   0x1   :  { %10 = vsyncpa [#allocation4], 0  ;;  %s3328_s15 = smov [#allocation2]  }
   0x2   :  { %s22_s16 = sshll.u32 %s3328_s15, 4  ;;  %s23_s16 = int_to_ptr.vmem [resolvable:$true] %s22_s16 }
   0x3   :  { %s3292_s17 = scalar_lea.vmem %s23_s16, 10752  ;;  %p3297_p1 = scmp.lt.s32.totalorder %s23_s16, %s23_s16 }
   0x4   :  { %p3293_p0 = scmp.ne.s32.totalorder %s23_s16, %s3292_s17  ;;  %p3298_p2 = scmp.lt.s32.totalorder %s3292_s17, %s3292_s17 }
   0x6   :  { %p3299_p3 = por %p3298_p2, %p3297_p1 }
   0x8   :  { %p3300_p4 = pnand %p3299_p3, %p3293_p0 }
   0xa   :  { %3303 = shalt.err (!%p3300_p4)
}
   0xb   :  { %s3329_s18 = smov 128   ;;  %s3330_s19 = smov 8  }
   0xc   :  { %28 = dma.hbm_to_vmem [thread:$0]  %s3635_s3, 10752, %s23_s16, [#allocation3], %s3329_s18, %s3329_s18, %s3330_s19  }
   0xd   :  { %3324 = dma.done.wait [#allocation3], 10752  }
   0xe   :  { %3325 = vsyncadd [#allocation3], 4294956544  ;;  %v3331_v0 = vmov 0   ;;  %vm169_vm0 = vcmask 1043456   ;;  %v33_v1 = vld [vmem:[%s3632_s0 + $0x8] sm:$0xff]  ;;  %v32_v2 = vld [vmem:[%s3632_s0] sm:$0xff]  ;;  %v36_v20 = vlaneseq }
   0xf   :  { %3221 = vset.pattern.permute.xlu1 %v3331_v0  ;;  %3220 = vset.pattern.permute.xlu0 %v3331_v0  ;;  %v62_v3 = vld [vmem:[#allocation2 + $0x60] sm:$0xf]  ;;  %v61_v4 = vld [vmem:[#allocation2 + $0x58] sm:$0xff]  ;;  %v35_v5 = vld [vmem:[%s3633_s1 + $0x8] sm:$0xff]  ;;  %vm83_vm1 = vcmask 1041408   ;;  %v3332_v19 = vmov 0.0  }
  0x10   :  { %42 = vperm.xlu1 %3221, %v33_v1   ;;  %39 = vperm.xlu0 %3220, %v32_v2   ;;  %v34_v6 = vld [vmem:[%s3633_s1] sm:$0xff]  ;;  %v60_v7 = vld [vmem:[#allocation2 + $0x50] sm:$0xff]  ;;  %v75_v8 = vld [vmem:[#allocation2 + $0x78] sm:$0x3]  ;;  %v37_v21 = vand.u32 127, %v36_v20  ;;  %vm162_vm2 = vcmask 818176  }
  0x11   :  { %2972 = vmatprep.subr.msk.mxu1 %vm169_vm0, %v62_v3  ;;  %v59_v9 = vld [vmem:[#allocation2 + $0x48] sm:$0xff]  ;;  %2967 = vmatprep.subr.msk.mxu0 %vm83_vm1, %v75_v8  ;;  %v58_v10 = vld [vmem:[#allocation2 + $0x40] sm:$0xff]  ;;  %v57_v11 = vld [vmem:[#allocation2 + $0x38] sm:$0xff]  ;;  %vm76_vm5 = vcmask 15360   ;;  %vm253_vm8 = vcmask 261120   ;;  %vm3333_vm9 = vmmov 0  }
  0x12   :  { %2973 = vmatpush3.msk.msra.mxu1 %vm169_vm0, %v62_v3  ;;  %2968 = vmatpush3.msk.msra.mxu0 %vm83_vm1, %v75_v8  ;;  %v56_v12 = vld [vmem:[#allocation2 + $0x30] sm:$0xff]  ;;  %v55_v13 = vld [vmem:[#allocation2 + $0x28] sm:$0xff]  ;;  %v54_v14 = vld [vmem:[#allocation2 + $0x20] sm:$0xff]  ;;  %s3334_s0 = smov 96   ;;  %vm408_vm10 = vcmask 130048   ;;  %vm562_vm11 = vcmask 64512  }
  0x13   :  { %2974 = vmatprep.subr.mxu1 %v61_v4  ;;  %v53_v15 = vld [vmem:[#allocation2 + $0x18] sm:$0xff]  ;;  %v52_v16 = vld [vmem:[#allocation2 + $0x10] sm:$0xff]  ;;  %v51_v17 = vld [vmem:[#allocation2 + $0x8] sm:$0xff]  ;;  %s3336_s6 = smov 80   ;;  %s3337_s7 = smov 112   ;;  %vm1330_vm12 = vcmask 523264  }
  0x14   :  { %67 = vperm.xlu1 %3221, %v35_v5   ;;  %64 = vperm.xlu0 %3220, %v34_v6   ;;  %v50_v18 = vld [vmem:[#allocation2] sm:$0xff]  ;;  %v248_v32 = vld [vmem:[#allocation2 + $0x68] sm:$0xff]  ;;  %v302_v53 = vld [vmem:[#allocation2 + $0x98] sm:$0xff]  ;;  %s3338_s8 = smov 48   ;;  %s3339_s9 = smov 16   ;;  %vm2595_vm13 = vcmask 1040384  }
  0x15   :  { %2975 = vmatpush3.msra.mxu1 %v61_v4  ;;  %v304_v51 = vld [vmem:[#allocation2 + $0xa8] sm:$0xff]  ;;  %v303_v52 = vld [vmem:[#allocation2 + $0xa0] sm:$0xff]  ;;  %v301_v54 = vld [vmem:[#allocation2 + $0x90] sm:$0xff]  ;;  %s3340_s10 = smov [#allocation5]   ;;  %vm2762_vm14 = vcmask 25600  }
  0x16   :  { %2976 = vmatprep.subr.mxu1 %v60_v7  ;;  %3001 = vmatprep.subr.mxu0 %v304_v51  ;;  %v2789_v62 = vld [vmem:[#allocation2 + $0x80] ss:$0 sm:$0xff]  ;;  %v2790_v0 = vld [vmem:[#allocation2 + $0x88] ss:$0 sm:$0xff]  ;;  %s2770_s11 = sshll.u32 %s3340_s10, 4  ;;  %s2771_s11 = int_to_ptr.vmem [resolvable:$true] %s2770_s11 }
  0x17   :  { %2977 = vmatpush3.msra.mxu1 %v60_v7  ;;  %v2791_v7 = vld [vmem:[#allocation2 + $0xb0] ss:$0 sm:$0xff]  ;;  %s3304_s12 = scalar_lea.vmem %s2771_s11, 32  ;;  %p3309_p6 = scmp.lt.s32.totalorder %s2771_s11, %s2771_s11 }
  0x18   :  { %2978 = vmatprep.subr.mxu1 %v59_v9  ;;  %p3305_p5 = scmp.ne.s32.totalorder %s2771_s11, %s3304_s12  ;;  %p3310_p7 = scmp.lt.s32.totalorder %s3304_s12, %s3304_s12 }
  0x19   :  { %2979 = vmatpush3.msra.mxu1 %v59_v9 }
  0x1a   :  { %2980 = vmatprep.subr.mxu1 %v58_v10  ;;  %p3311_p8 = por %p3310_p7, %p3309_p6 }
  0x1b   :  { %2981 = vmatpush3.msra.mxu1 %v58_v10 }
  0x1c   :  { %2982 = vmatprep.subr.mxu1 %v57_v11  ;;  %p3312_p9 = pnand %p3311_p8, %p3305_p5 }
  0x1d   :  { %2983 = vmatpush3.msra.mxu1 %v57_v11 }
  0x1e   :  { %2984 = vmatprep.subr.mxu1 %v56_v12 }
  0x1f   :  { %2985 = vmatpush3.msra.mxu1 %v56_v12 }
  0x20   :  { %2986 = vmatprep.subr.mxu1 %v55_v13 }
  0x21   :  { %2987 = vmatpush3.msra.mxu1 %v55_v13 }
  0x22   :  { %2988 = vmatprep.subr.mxu1 %v54_v14 }
  0x23   :  { %2989 = vmatpush3.msra.mxu1 %v54_v14 }
  0x24   :  { %2990 = vmatprep.subr.mxu1 %v53_v15 }
  0x25   :  { %2991 = vmatpush3.msra.mxu1 %v53_v15 }
  0x26   :  { %2992 = vmatprep.subr.mxu1 %v52_v16 }
  0x27   :  { %2993 = vmatpush3.msra.mxu1 %v52_v16  ;;  %v293_v16 = vld [vmem:[%s3634_s2] sm:$0x1] }
  0x28   :  { %2994 = vmatprep.subr.mxu1 %v51_v17 }
  0x29   :  { %2995 = vmatpush3.msra.mxu1 %v51_v17  ;;  %v295_v17 = vcvt.s32.f32 %v293_v16 }
  0x2a   :  { %2996 = vmatprep.subr.mxu1 %v50_v18 }
  0x2b   :  { %2997 = vmatpush3.msra.mxu1 %v50_v18  ;;  %v294_v18 = vld [vmem:[%s3634_s2 + $0x1] sm:$0x1]  ;;  %s3335_s2 = smov 64  }
  0x2c   :  { %3037 = vmatprep.subr.mxu1 %v3332_v19 }
  0x8b   :  { %v43_v22 = vpop.permute.xlu1 %42  ;;  %v40_v23 = vpop.permute.xlu0 %39 }
  0x8c   :  { %vm45_vm3 = vcmp.eq.s32.totalorder %v37_v21, %v43_v22  ;;  %vm44_vm4 = vcmp.eq.s32.totalorder %v37_v21, %v40_v23  ;;  %v396_v22 = vshrl.u32 %v36_v20, 7  ;;  %v296_v23 = vcvt.s32.f32 %v294_v18 }
  0x8d   :  { %v2780_v24 = vsel %vm45_vm3, 1.0, %v3332_v19  ;;  %v2779_v25 = vsel %vm44_vm4, 1.0, %v3332_v19 }
  0x8e   :  { %2998 = vmatprep.mubr.msk.f32.mxu1 %vm162_vm2, %v2779_v25  ;;  %v397_v25 = vsub.s32 0, %v396_v22 }
  0x8f   :  { %v68_v26 = vpop.permute.xlu1 %67  ;;  %2999 = vmatmul.mubr.msk.f32.vlgmr.msra.gmra.mxu1 %vm162_vm2, %v2780_v24  ;;  %v65_v27 = vpop.permute.xlu0 %64 }
  0x90   :  { %vm70_vm6 = vcmp.eq.s32.totalorder %v37_v21, %v68_v26  ;;  %vm69_vm7 = vcmp.eq.s32.totalorder %v37_v21, %v65_v27  ;;  %3039 = vmatprep.mubr.msk.f32.mxu1 %vm3333_vm9, %v3332_v19  ;;  %v297_v21 = vsub.f32 1.0, %v295_v17  ;;  %v298_v26 = vsub.f32 1.0, %v296_v23 }
  0x91   :  { %v2782_v28 = vsel %vm70_vm6, 1.0, %v3332_v19  ;;  %v2781_v29 = vsel %vm69_vm7, 1.0, %v3332_v19 }
  0x92   :  { %2969 = vmatprep.mubr.msk.f32.mxu0 %vm76_vm5, %v2781_v29  ;;  %v299_v24 = vmul.f32 -1e+09, %v297_v21 }
  0x93   :  { %2970 = vmatmul.mubr.msk.f32.vlgmr.msra.gmra.mxu0 %vm76_vm5, %v2782_v28  ;;  %v300_v28 = vmul.f32 -1e+09, %v298_v26 }
  0x94   :  { %3002 = vmatpush3.msra.mxu0 %v304_v51  ;;  %v3431_v27 = vrot.slane %v299_v24, %v397_v25 }
  0x95   :  { %3003 = vmatprep.subr.mxu0 %v303_v52 }
  0x96   :  { %3004 = vmatpush3.msra.mxu0 %v303_v52 }
  0x97   :  { %3005 = vmatprep.subr.mxu0 %v302_v53 }
  0x98   :  { %3006 = vmatpush3.msra.mxu0 %v302_v53 }
  0x99   :  { %3007 = vmatprep.subr.mxu0 %v301_v54 }
  0x9a   :  { %3008 = vmatpush3.msra.mxu0 %v301_v54 }
  0x9b   :  { %3012 = vmatprep.subr.mxu0 %v3332_v19 }
 0x14f   :  { %v3000_v30 = vpop.f32.mrf.mxu1 }
 0x151   :  { %v239_v34 = vpop.f32.mrf.mxu1 }
 0x153   :  { %v2971_v31 = vpop.f32.mrf.mxu0 }
 0x154   :  { %v245_v33 = vadd.f32 %v3000_v30, %v2971_v31  ;;  %v3434_v31 = vrot.slane %v300_v28, %v397_v25 }
 0x155   :  { %v153_v35 = vpop.f32.mrf.mxu0 }
 0x156   :  { %v240_v36 = vadd.f32 %v239_v34, %v153_v35  ;;  %v250_v37 = vadd.f32 %v248_v32, %v245_v33 }
 0x158   :  { %v257_v38 = vsel %vm253_vm8, %v250_v37, 0.0  ;;  %v249_v39 = vadd.f32 %v248_v32, %v240_v36 }
 0x159   :  { %258 = vadd.xlane.f32.xlu1 %v257_v38 }
 0x15a   :  { %v254_v40 = vsel %vm253_vm8, %v249_v39, 0.0 }
 0x15b   :  { %255 = vadd.xlane.f32.xlu0 %v254_v40 }
 0x1e2   :  { %v259_v41 = vpop.xlane.xlu1 %258 }
 0x1e3   :  { %v262_v42 = vmul.f32 0.03125, %v259_v41 }
 0x1e4   :  { %v256_v43 = vpop.xlane.xlu0 %255 }
 0x1e5   :  { %v261_v44 = vmul.f32 0.03125, %v256_v43  ;;  %v264_v45 = vsub.f32 %v250_v37, %v262_v42 }
 0x1e7   :  { %v263_v46 = vsub.f32 %v249_v39, %v261_v44  ;;  %v266_v49 = vmul.f32 %v264_v45, %v264_v45 }
 0x1e9   :  { %v265_v47 = vmul.f32 %v263_v46, %v263_v46  ;;  %v270_v50 = vsel %vm253_vm8, %v266_v49, 0.0 }
 0x1eb   :  { %v267_v48 = vsel %vm253_vm8, %v265_v47, 0.0 }
 0x1ec   :  { %268 = vadd.xlane.f32.xlu0 %v267_v48 }
 0x1f0   :  { %271 = vadd.xlane.f32.xlu0 %v270_v50 }
 0x275   :  { %v269_v55 = vpop.xlane.xlu0 %268 }
 0x276   :  { %v273_v56 = vmul.f32 0.03125, %v269_v55 }
 0x278   :  { %v275_v57 = vadd.f32 1e-12, %v273_v56 }
 0x279   :  { %v272_v58 = vpop.xlane.xlu0 %271 }
 0x27a   :  { %3222 = vrsqrt.f32 %v275_v57  ;;  %v274_v59 = vmul.f32 0.03125, %v272_v58 }
 0x27c   :  { %v276_v60 = vadd.f32 1e-12, %v274_v59 }
 0x27e   :  { %3224 = vrsqrt.f32 %v276_v60 }
 0x287   :  { %v3223_v61 = vpop.eup %3222 }
 0x288   :  { %v279_v63 = vmul.f32 %v3223_v61, %v263_v46 }
 0x28a   :  { %v285_v1 = vmul.f32 %v2789_v62, %v279_v63 }
 0x28b   :  { %v3225_v2 = vpop.eup %3224 }
 0x28c   :  { %v280_v3 = vmul.f32 %v3225_v2, %v264_v45  ;;  %v3392_v4 = vadd.f32 %v2790_v0, %v285_v1 }
 0x28e   :  { %v286_v5 = vmul.f32 %v2789_v62, %v280_v3  ;;  %3009 = vmatprep.mubr.msk.f32.mxu0 %vm253_vm8, %v3392_v4 }
 0x290   :  { %v3396_v6 = vadd.f32 %v2790_v0, %v286_v5 }
 0x292   :  { %3010 = vmatmul.mubr.msk.f32.vlgmr.msra.gmra.mxu0 %vm253_vm8, %v3396_v6 }
 0x293   :  { %3014 = vmatprep.mubr.msk.f32.mxu0 %vm3333_vm9, %v3332_v19 }
 0x352   :  { %v3011_v8 = vpop.f32.mrf.mxu0 }
 0x353   :  { %v3404_v9 = vadd.f32 %v3011_v8, %v2791_v7 }
 0x354   :  { %v382_v10 = vpop.f32.mrf.mxu0 }
 0x355   :  { %v3406_v11 = vadd.f32 %v2791_v7, %v382_v10  ;;  %485 = vrot.lane.b32.xlu0 %v3404_v9, %s3334_s0  ;;  %v392_v15 = vmul.f32 0.25, %v3404_v9 }
 0x357   :  { %406 = vrot.lane.b32.xlu1 %v3406_v11, %s3334_s0  ;;  %v391_v13 = vmul.f32 0.25, %v3406_v11 }
 0x3c7   :  { %v486_v14 = vpop.permute.xlu0 %485 }
 0x3c9   :  { %v407_v12 = vpop.permute.xlu1 %406 }
 0x3ca   :  { %3013 = vmatpush3.xpose.msk.msra.mxu0 %vm408_vm10, %v407_v12 }
 0x3cb   :  { %3017 = vmatprep.subr.mxu0 %v3332_v19 }
 0x3cd   :  { %3015 = vmatmul.mubr.msk.f32.vlgmr.msra.gmra.mxu0 %vm408_vm10, %v391_v13 }
 0x3ce   :  { %3018 = vmatpush3.xpose.msk.msra.mxu0 %vm408_vm10, %v486_v14  ;;  %3019 = vmatprep.mubr.msk.f32.mxu0 %vm3333_vm9, %v3332_v19 }
 0x3cf   :  { %3022 = vmatprep.subr.mxu0 %v3332_v19 }
 0x3d1   :  { %3020 = vmatmul.mubr.msk.f32.vlgmr.msra.gmra.mxu0 %vm408_vm10, %v392_v15 }
 0x3d2   :  { %3024 = vmatprep.mubr.msk.f32.mxu0 %vm3333_vm9, %v3332_v19 }
 0x48d   :  { %v480_v29 = vpop.f32.mrf.mxu0 }
 0x48e   :  { %v481_v30 = vadd.f32 %v480_v29, %v3431_v27 }
 0x48f   :  { %v3016_v32 = vpop.f32.mrf.mxu0 }
 0x490   :  { %v563_v33 = vsel %vm562_vm11, %v481_v30, -inf  ;;  %v1080_v32 = vld [vmem:[#allocation2 + $0xd0] sm:$0xff] }
 0x491   :  { %564 = vmax.xlane.f32.xlu1 %v563_v33  ;;  %v558_v34 = vpop.f32.mrf.mxu0  ;;  %v1079_v33 = vld [vmem:[#allocation2 + $0xc8] sm:$0xff] }
 0x492   :  { %v559_v20 = vadd.f32 %v558_v34, %v3434_v31 }
 0x493   :  { %v3021_v35 = vpop.f32.mrf.mxu0 }
 0x494   :  { %v566_v36 = vsel %vm562_vm11, %v559_v20, -inf }
 0x495   :  { %567 = vmax.xlane.f32.xlu0 %v566_v36 }
 0x4a2   :  { %585 = vrot.lane.b32.xlu1 %v3406_v11, %s3335_s2 }
 0x51a   :  { %v565_v37 = vpop.xlane.xlu1 %564 }
 0x51b   :  { %v569_v38 = vsub.f32 %v481_v30, %v565_v37 }
 0x51d   :  { %v571_v39 = vmul.f32 1.442695, %v569_v38 }
 0x51e   :  { %v586_v40 = vpop.permute.xlu1 %585  ;;  %v568_v41 = vpop.xlane.xlu0 %567 }
 0x51f   :  { %3226 = vpow2.f32 %v571_v39  ;;  %v570_v42 = vsub.f32 %v559_v20, %v568_v41  ;;  %3023 = vmatpush3.msra.mxu0 %v586_v40  ;;  %v1077_v20 = vld [vmem:[#allocation2 + $0xb8] sm:$0xff] }
 0x520   :  { %3027 = vmatprep.subr.mxu0 %v3332_v19 }
 0x521   :  { %v573_v43 = vmul.f32 1.442695, %v570_v42  ;;  %v2806_v42 = vld [vmem:[#allocation2 + $0xd8] ss:$0 sm:$0xff] }
 0x523   :  { %3228 = vpow2.f32 %v573_v43 }
 0x52c   :  { %v3227_v44 = vpop.eup %3226 }
 0x52d   :  { %v575_v45 = vsel %vm562_vm11, %v3227_v44, 0.0 }
 0x52e   :  { %576 = vadd.xlane.f32.xlu1 %v575_v45 }
 0x530   :  { %v3229_v46 = vpop.eup %3228 }
 0x531   :  { %v578_v47 = vsel %vm562_vm11, %v3229_v46, 0.0 }
 0x532   :  { %579 = vadd.xlane.f32.xlu0 %v578_v47 }
 0x53f   :  { %739 = vrot.lane.b32.xlu1 %v3406_v11, %s3336_s6 }
 0x543   :  { %817 = vrot.lane.b32.xlu1 %v3404_v9, %s3336_s6 }
 0x547   :  { %815 = vrot.lane.b32.xlu1 %v392_v15, %s3337_s7 }
 0x548   :  { %661 = vrot.lane.b32.xlu0 %v3404_v9, %s3335_s2 }
 0x54c   :  { %737 = vrot.lane.b32.xlu0 %v391_v13, %s3337_s7 }
 0x5b7   :  { %v577_v48 = vpop.xlane.xlu1 %576 }
 0x5b8   :  { %3230 = vrcp.f32 %v577_v48 }
 0x5bb   :  { %v740_v49 = vpop.permute.xlu1 %739  ;;  %v580_v50 = vpop.xlane.xlu0 %579 }
 0x5bc   :  { %3232 = vrcp.f32 %v580_v50 }
 0x5bf   :  { %v818_v51 = vpop.permute.xlu1 %817  ;;  %v662_v55 = vpop.permute.xlu0 %661 }
 0x5c0   :  { %3038 = vmatpush3.xpose.msk.msra.mxu1 %vm408_vm10, %v818_v51 }
 0x5c1   :  { %3047 = vmatprep.subr.mxu1 %v3332_v19 }
 0x5c3   :  { %v816_v52 = vpop.permute.xlu1 %815  ;;  %v738_v58 = vpop.permute.xlu0 %737 }
 0x5c4   :  { %3040 = vmatmul.mubr.msk.f32.vlgmr.msra.gmra.mxu1 %vm408_vm10, %v816_v52 }
 0x5c5   :  { %v3231_v53 = vpop.eup %3230  ;;  %3049 = vmatprep.mubr.msk.f32.mxu1 %vm3333_vm9, %v3332_v19 }
 0x5c6   :  { %v582_v54 = vmul.f32 %v3231_v53, %v3227_v44 }
 0x5c8   :  { %3025 = vmatmul.mubr.msk.f32.vlgmr.msra.gmra.mxu0 %vm562_vm11, %v582_v54 }
 0x5c9   :  { %v3233_v56 = vpop.eup %3232  ;;  %3028 = vmatpush3.msra.mxu0 %v662_v55  ;;  %3029 = vmatprep.mubr.msk.f32.mxu0 %vm3333_vm9, %v3332_v19 }
 0x5ca   :  { %3032 = vmatprep.subr.mxu0 %v3332_v19  ;;  %v584_v57 = vmul.f32 %v3233_v56, %v3229_v46 }
 0x5cc   :  { %3030 = vmatmul.mubr.msk.f32.vlgmr.msra.gmra.mxu0 %vm562_vm11, %v584_v57 }
 0x5cd   :  { %3033 = vmatpush3.xpose.msk.msra.mxu0 %vm408_vm10, %v740_v49  ;;  %3034 = vmatprep.mubr.msk.f32.mxu0 %vm3333_vm9, %v3332_v19 }
 0x5ce   :  { %3042 = vmatprep.subr.mxu0 %v3332_v19 }
 0x5d0   :  { %3035 = vmatmul.mubr.msk.f32.vlgmr.msra.gmra.mxu0 %vm408_vm10, %v738_v58 }
 0x5d1   :  { %3044 = vmatprep.mubr.msk.f32.mxu0 %vm3333_vm9, %v3332_v19 }
 0x684   :  { %v889_v59 = vpop.f32.mrf.mxu1 }
 0x685   :  { %v890_v60 = vadd.f32 %v889_v59, %v3434_v31 }
 0x686   :  { %v3041_v61 = vpop.f32.mrf.mxu1 }
 0x687   :  { %v896_v62 = vsel %vm562_vm11, %v890_v60, -inf  ;;  %v1210_v61 = vld [vmem:[#allocation2 + $0xf8] sm:$0xff] }
 0x688   :  { %897 = vmax.xlane.f32.xlu1 %v896_v62  ;;  %v657_v63 = vpop.f32.mrf.mxu0  ;;  %v1209_v62 = vld [vmem:[#allocation2 + $0xf0] sm:$0xff] }
 0x68a   :  { %v3026_v0 = vpop.f32.mrf.mxu0 }
 0x68c   :  { %v733_v1 = vpop.f32.mrf.mxu0 }
 0x68e   :  { %v3031_v2 = vpop.f32.mrf.mxu0 }
 0x690   :  { %v811_v3 = vpop.f32.mrf.mxu0 }
 0x691   :  { %v812_v5 = vadd.f32 %v811_v3, %v3431_v27 }
 0x692   :  { %v3036_v7 = vpop.f32.mrf.mxu0 }
 0x693   :  { %v893_v8 = vsel %vm562_vm11, %v812_v5, -inf }
 0x694   :  { %894 = vmax.xlane.f32.xlu0 %v893_v8  ;;  %v2809_v8 = vld [vmem:[#allocation2 + $0xe0] ss:$0 sm:$0xff] }
 0x699   :  { %915 = vrot.lane.b32.xlu1 %v3406_v11, %s3338_s8 }
 0x711   :  { %v898_v10 = vpop.xlane.xlu1 %897 }
 0x712   :  { %v900_v12 = vsub.f32 %v890_v60, %v898_v10  ;;  %v1212_v60 = vld [vmem:[#allocation2 + $0x108] sm:$0xff] }
 0x714   :  { %v903_v13 = vmul.f32 1.442695, %v900_v12  ;;  %v2810_v12 = vld [vmem:[#allocation2 + $0xe8] ss:$0 sm:$0xff] }
 0x715   :  { %v916_v14 = vpop.permute.xlu1 %915 }
 0x716   :  { %3234 = vpow2.f32 %v903_v13  ;;  %3043 = vmatpush3.msra.mxu0 %v916_v14 }
 0x717   :  { %3052 = vmatprep.subr.mxu0 %v1080_v32 }
 0x71d   :  { %v895_v15 = vpop.xlane.xlu0 %894 }
 0x71e   :  { %v899_v16 = vsub.f32 %v812_v5, %v895_v15 }
 0x720   :  { %v901_v17 = vmul.f32 1.442695, %v899_v16 }
 0x722   :  { %3236 = vpow2.f32 %v901_v17 }
 0x723   :  { %v3235_v18 = vpop.eup %3234 }
 0x724   :  { %v908_v21 = vsel %vm562_vm11, %v3235_v18, 0.0 }
 0x725   :  { %909 = vadd.xlane.f32.xlu0 %v908_v21  ;;  %v1324_v21 = vld [vmem:[#allocation2 + $0x150] sm:$0xff] }
 0x72f   :  { %v3237_v22 = vpop.eup %3236 }
 0x730   :  { %v905_v23 = vsel %vm562_vm11, %v3237_v22, 0.0 }
 0x731   :  { %906 = vadd.xlane.f32.xlu0 %v905_v23  ;;  %v1322_v23 = vld [vmem:[#allocation2 + $0x140] sm:$0xff] }
 0x747   :  { %991 = vrot.lane.b32.xlu0 %v3404_v9, %s3338_s8  ;;  %v1078_v9 = vld [vmem:[#allocation2 + $0xc0] sm:$0xff] }
 0x7ae   :  { %v910_v11 = vpop.xlane.xlu0 %909 }
 0x7af   :  { %3238 = vrcp.f32 %v910_v11  ;;  %v1321_v11 = vld [vmem:[#allocation2 + $0x138] sm:$0xff] }
 0x7ba   :  { %v907_v24 = vpop.xlane.xlu0 %906 }
 0x7bb   :  { %3240 = vrcp.f32 %v907_v24  ;;  %v1320_v24 = vld [vmem:[#allocation2 + $0x130] sm:$0xff] }
 0x7bc   :  { %v3239_v25 = vpop.eup %3238 }
 0x7bd   :  { %v914_v26 = vmul.f32 %v3239_v25, %v3235_v18  ;;  %v1319_v25 = vld [vmem:[#allocation2 + $0x128] sm:$0xff] }
 0x7be   :  { %v992_v28 = vpop.permute.xlu0 %991 }
 0x7bf   :  { %3048 = vmatpush3.msra.mxu1 %v992_v28  ;;  %v1317_v28 = vld [vmem:[#allocation2 + $0x118] sm:$0xff] }
 0x7c0   :  { %3050 = vmatmul.mubr.msk.f32.vlgmr.msra.gmra.mxu1 %vm562_vm11, %v914_v26  ;;  %3063 = vmatprep.subr.mxu1 %v1212_v60  ;;  %v1318_v26 = vld [vmem:[#allocation2 + $0x120] sm:$0xff] }
 0x7c1   :  { %3064 = vmatpush3.msra.mxu1 %v1212_v60 }
 0x7c8   :  { %v3241_v29 = vpop.eup %3240 }
 0x7c9   :  { %v912_v30 = vmul.f32 %v3241_v29, %v3237_v22  ;;  %v1323_v22 = vld [vmem:[#allocation2 + $0x148] sm:$0xff]  ;;  %v2811_v29 = vld [vmem:[#allocation2 + $0x110] ss:$0 sm:$0xff] }
 0x7cb   :  { %3045 = vmatmul.mubr.msk.f32.vlgmr.msra.gmra.mxu0 %vm562_vm11, %v912_v30 }
 0x7cc   :  { %3053 = vmatpush3.msra.mxu0 %v1080_v32 }
 0x7cd   :  { %3054 = vmatprep.subr.mxu0 %v1079_v33 }
 0x7ce   :  { %3055 = vmatpush3.msra.mxu0 %v1079_v33 }
 0x7cf   :  { %3056 = vmatprep.subr.mxu0 %v1078_v9 }
 0x7d0   :  { %3057 = vmatpush3.msra.mxu0 %v1078_v9 }
 0x7d1   :  { %3058 = vmatprep.subr.mxu0 %v1077_v20 }
 0x7d2   :  { %3059 = vmatpush3.msra.mxu0 %v1077_v20 }
 0x7d3   :  { %3074 = vmatprep.subr.mxu0 %v1324_v21 }
 0x880   :  { %v1063_v34 = vpop.f32.mrf.mxu1 }
 0x882   :  { %v3051_v35 = vpop.f32.mrf.mxu1 }
 0x88b   :  { %v987_v36 = vpop.f32.mrf.mxu0 }
 0x88c   :  { %1069 = vrot.lane.b32.xlu1 %v987_v36, %s3339_s9 }
 0x88d   :  { %v3046_v37 = vpop.f32.mrf.mxu0 }
 0x890   :  { %1071 = vrot.lane.b32.xlu1 %v1063_v34, %s3339_s9 }
 0x8fe   :  { %v1070_v38 = vpop.permute.xlu1 %1069 }
 0x8ff   :  { %v1075_v39 = vsel %vm408_vm10, %v657_v63, %v1070_v38 }
 0x900   :  { %3060 = vmatprep.mubr.msk.f32.mxu0 %vm253_vm8, %v1075_v39 }
 0x902   :  { %v1072_v40 = vpop.permute.xlu1 %1071 }
 0x903   :  { %v1076_v41 = vsel %vm408_vm10, %v733_v1, %v1072_v40 }
 0x904   :  { %3061 = vmatmul.mubr.msk.f32.vlgmr.msra.gmra.mxu0 %vm253_vm8, %v1076_v41 }
 0x905   :  { %3075 = vmatpush3.msra.mxu0 %v1324_v21  ;;  %v2817_v21 = vld [vmem:[#allocation2 + $0x160] ss:$0 sm:$0xff] }
 0x906   :  { %3076 = vmatprep.subr.mxu0 %v1323_v22 }
 0x907   :  { %3077 = vmatpush3.msra.mxu0 %v1323_v22 }
 0x908   :  { %3078 = vmatprep.subr.mxu0 %v1322_v23 }
 0x909   :  { %3079 = vmatpush3.msra.mxu0 %v1322_v23 }
 0x90a   :  { %3080 = vmatprep.subr.mxu0 %v1321_v11 }
 0x90b   :  { %3081 = vmatpush3.msra.mxu0 %v1321_v11 }
 0x90c   :  { %3082 = vmatprep.subr.mxu0 %v1320_v24 }
 0x90d   :  { %3083 = vmatpush3.msra.mxu0 %v1320_v24 }
 0x90e   :  { %3084 = vmatprep.subr.mxu0 %v1319_v25 }
 0x90f   :  { %3085 = vmatpush3.msra.mxu0 %v1319_v25  ;;  %v2818_v25 = vld [vmem:[#allocation2 + $0x168] ss:$0 sm:$0xff] }
 0x910   :  { %3086 = vmatprep.subr.mxu0 %v1318_v26 }
 0x911   :  { %3087 = vmatpush3.msra.mxu0 %v1318_v26 }
 0x912   :  { %3088 = vmatprep.subr.mxu0 %v1317_v28 }
 0x913   :  { %3089 = vmatpush3.msra.mxu0 %v1317_v28 }
 0x914   :  { %3114 = vmatprep.subr.mxu0 %v3332_v19 }
 0x9c4   :  { %v3062_v43 = vpop.f32.mrf.mxu0 }
 0x9c5   :  { %v1164_v44 = vadd.f32 %v3062_v43, %v2806_v42 }
 0x9c6   :  { %v1158_v45 = vpop.f32.mrf.mxu0 }
 0x9c7   :  { %v1159_v46 = vadd.f32 %v2806_v42, %v1158_v45  ;;  %v1168_v47 = vadd.f32 %v1164_v44, %v3396_v6 }
 0x9c9   :  { %v1174_v48 = vsel %vm253_vm8, %v1168_v47, 0.0  ;;  %v1167_v49 = vadd.f32 %v1159_v46, %v3392_v4  ;;  %v1211_v4 = vld [vmem:[#allocation2 + $0x100] sm:$0xff] }
 0x9ca   :  { %1175 = vadd.xlane.f32.xlu1 %v1174_v48  ;;  %3065 = vmatprep.subr.mxu1 %v1211_v4 }
 0x9cb   :  { %v1171_v50 = vsel %vm253_vm8, %v1167_v49, 0.0  ;;  %3066 = vmatpush3.msra.mxu1 %v1211_v4 }
 0x9cc   :  { %1172 = vadd.xlane.f32.xlu0 %v1171_v50  ;;  %3067 = vmatprep.subr.mxu1 %v1210_v61 }
 0x9cd   :  { %3068 = vmatpush3.msra.mxu1 %v1210_v61 }
 0x9ce   :  { %3069 = vmatprep.subr.mxu1 %v1209_v62 }
 0x9cf   :  { %3070 = vmatpush3.msra.mxu1 %v1209_v62 }
 0xa53   :  { %v1176_v51 = vpop.xlane.xlu1 %1175 }
 0xa54   :  { %v1178_v52 = vmul.f32 0.03125, %v1176_v51  ;;  %v2814_v51 = vld [vmem:[#allocation2 + $0x158] ss:$0 sm:$0xff] }
 0xa55   :  { %v1173_v53 = vpop.xlane.xlu0 %1172 }
 0xa56   :  { %v1177_v54 = vmul.f32 0.03125, %v1173_v53  ;;  %v1180_v55 = vsub.f32 %v1168_v47, %v1178_v52 }
 0xa58   :  { %v1179_v56 = vsub.f32 %v1167_v49, %v1177_v54  ;;  %v1182_v59 = vmul.f32 %v1180_v55, %v1180_v55 }
 0xa5a   :  { %v1181_v57 = vmul.f32 %v1179_v56, %v1179_v56  ;;  %v1186_v6 = vsel %vm253_vm8, %v1182_v59, 0.0 }
 0xa5c   :  { %v1183_v58 = vsel %vm253_vm8, %v1181_v57, 0.0 }
 0xa5d   :  { %1184 = vadd.xlane.f32.xlu0 %v1183_v58 }
 0xa61   :  { %1187 = vadd.xlane.f32.xlu0 %v1186_v6 }
 0xae6   :  { %v1185_v63 = vpop.xlane.xlu0 %1184 }
 0xae7   :  { %v1189_v0 = vmul.f32 0.03125, %v1185_v63 }
 0xae9   :  { %v1191_v1 = vadd.f32 1e-12, %v1189_v0 }
 0xaea   :  { %v1188_v2 = vpop.xlane.xlu0 %1187 }
 0xaeb   :  { %3242 = vrsqrt.f32 %v1191_v1  ;;  %v1190_v3 = vmul.f32 0.03125, %v1188_v2 }
 0xaed   :  { %v1192_v5 = vadd.f32 1e-12, %v1190_v3 }
 0xaef   :  { %3244 = vrsqrt.f32 %v1192_v5  ;;  %v1457_v5 = vld [vmem:[#allocation2 + $0x188] sm:$0xff] }
 0xaf0   :  { %3093 = vmatprep.subr.mxu1 %v1457_v5 }
 0xaf8   :  { %v3243_v7 = vpop.eup %3242 }
 0xaf9   :  { %v1195_v10 = vmul.f32 %v3243_v7, %v1179_v56  ;;  %v1456_v7 = vld [vmem:[#allocation2 + $0x180] sm:$0xff] }
 0xafb   :  { %v1201_v13 = vmul.f32 %v2809_v8, %v1195_v10  ;;  %v1454_v10 = vld [vmem:[#allocation2 + $0x170] sm:$0xff] }
 0xafc   :  { %v3245_v14 = vpop.eup %3244 }
 0xafd   :  { %v1196_v15 = vmul.f32 %v3245_v14, %v1180_v55  ;;  %v3493_v16 = vadd.f32 %v2810_v12, %v1201_v13 }
 0xaff   :  { %v1202_v17 = vmul.f32 %v2809_v8, %v1196_v15  ;;  %3071 = vmatprep.mubr.msk.f32.mxu1 %vm253_vm8, %v3493_v16  ;;  %v1455_v8 = vld [vmem:[#allocation2 + $0x178] sm:$0xff] }
 0xb01   :  { %v1208_v18 = vadd.f32 %v2810_v12, %v1202_v17 }
 0xb03   :  { %3072 = vmatmul.mubr.msk.f32.vlgmr.msra.gmra.mxu1 %vm253_vm8, %v1208_v18 }
 0xb04   :  { %3094 = vmatpush3.msra.mxu1 %v1457_v5 }
 0xb05   :  { %3095 = vmatprep.subr.mxu1 %v1456_v7 }
 0xb06   :  { %3096 = vmatpush3.msra.mxu1 %v1456_v7 }
 0xb07   :  { %3097 = vmatprep.subr.mxu1 %v1455_v8 }
 0xb08   :  { %3098 = vmatpush3.msra.mxu1 %v1455_v8 }
 0xb09   :  { %3099 = vmatprep.subr.mxu1 %v1454_v10 }
 0xb0a   :  { %3100 = vmatpush3.msra.mxu1 %v1454_v10 }
 0xb0b   :  { %3104 = vmatprep.subr.mxu1 %v3332_v19 }
 0xbc3   :  { %v3073_v30 = vpop.f32.mrf.mxu1 }
 0xbc4   :  { %v1296_v32 = vadd.f32 %v3073_v30, %v2811_v29  ;;  %v2819_v30 = vld [vmem:[#allocation2 + $0x190] ss:$0 sm:$0xff] }
 0xbc5   :  { %v1290_v33 = vpop.f32.mrf.mxu1 }
 0xbc6   :  { %v1302_v9 = vmul.f32 %v1296_v32, %v1296_v32  ;;  %v1291_v34 = vadd.f32 %v2811_v29, %v1290_v33  ;;  %v1300_v48 = vmul.f32 0.5, %v1296_v32 }
 0xbc8   :  { %v1304_v20 = vmul.f32 %v1302_v9, %v1296_v32  ;;  %v1301_v35 = vmul.f32 %v1291_v34, %v1291_v34  ;;  %v1299_v46 = vmul.f32 0.5, %v1291_v34 }
 0xbca   :  { %v1306_v36 = vmul.f32 0.044715, %v1304_v20  ;;  %v1303_v37 = vmul.f32 %v1301_v35, %v1291_v34 }
 0xbcc   :  { %v1308_v38 = vadd.f32 %v1306_v36, %v1296_v32  ;;  %v1305_v39 = vmul.f32 0.044715, %v1303_v37 }
 0xbce   :  { %v1310_v40 = vmul.f32 0.7978846, %v1308_v38  ;;  %v1307_v41 = vadd.f32 %v1305_v39, %v1291_v34 }
 0xbd0   :  { %3246 = vtanh.f32 %v1310_v40  ;;  %v1309_v42 = vmul.f32 0.7978846, %v1307_v41 }
 0xbd2   :  { %3248 = vtanh.f32 %v1309_v42 }
 0xbdd   :  { %v3247_v43 = vpop.eup %3246 }
 0xbde   :  { %v1314_v45 = vadd.f32 1.0, %v3247_v43 }
 0xbdf   :  { %v3249_v44 = vpop.eup %3248 }
 0xbe0   :  { %v1313_v47 = vadd.f32 1.0, %v3249_v44  ;;  %v1316_v50 = vmul.f32 %v1314_v45, %v1300_v48 }
 0xbe2   :  { %v1315_v49 = vmul.f32 %v1313_v47, %v1299_v46 }
 0xbe4   :  { %3090 = vmatprep.mubr.msk.f32.mxu0 %vm1330_vm12, %v1315_v49 }
 0xbe5   :  { %3091 = vmatmul.mubr.msk.f32.vlgmr.msra.gmra.mxu0 %vm1330_vm12, %v1316_v50 }
 0xbe6   :  { %3116 = vmatprep.mubr.msk.f32.mxu0 %vm3333_vm9, %v3332_v19 }
 0xca5   :  { %v3092_v52 = vpop.f32.mrf.mxu0 }
 0xca6   :  { %v1409_v53 = vadd.f32 %v3092_v52, %v2814_v51 }
 0xca7   :  { %v1403_v54 = vpop.f32.mrf.mxu0 }
 0xca8   :  { %v1404_v55 = vadd.f32 %v2814_v51, %v1403_v54  ;;  %v1413_v56 = vadd.f32 %v1409_v53, %v1208_v18 }
 0xcaa   :  { %v1419_v57 = vsel %vm253_vm8, %v1413_v56, 0.0  ;;  %v1412_v58 = vadd.f32 %v1404_v55, %v3493_v16 }
 0xcab   :  { %1420 = vadd.xlane.f32.xlu0 %v1419_v57 }
 0xcac   :  { %v1416_v59 = vsel %vm253_vm8, %v1412_v58, 0.0 }
 0xcad   :  { %1417 = vadd.xlane.f32.xlu1 %v1416_v59 }
 0xd34   :  { %v1421_v6 = vpop.xlane.xlu0 %1420 }
 0xd35   :  { %v1423_v60 = vmul.f32 0.03125, %v1421_v6 }
 0xd36   :  { %v1418_v4 = vpop.xlane.xlu1 %1417 }
 0xd37   :  { %v1425_v61 = vsub.f32 %v1413_v56, %v1423_v60  ;;  %v1422_v62 = vmul.f32 0.03125, %v1418_v4 }
 0xd39   :  { %v1424_v63 = vsub.f32 %v1412_v58, %v1422_v62  ;;  %v1427_v0 = vmul.f32 %v1425_v61, %v1425_v61 }
 0xd3b   :  { %v1431_v1 = vsel %vm253_vm8, %v1427_v0, 0.0  ;;  %v1426_v2 = vmul.f32 %v1424_v63, %v1424_v63 }
 0xd3c   :  { %1432 = vadd.xlane.f32.xlu0 %v1431_v1 }
 0xd3d   :  { %v1428_v3 = vsel %vm253_vm8, %v1426_v2, 0.0 }
 0xd3e   :  { %1429 = vadd.xlane.f32.xlu1 %v1428_v3 }
 0xdc5   :  { %v1433_v12 = vpop.xlane.xlu0 %1432 }
 0xdc6   :  { %v1435_v13 = vmul.f32 0.03125, %v1433_v12 }
 0xdc7   :  { %v1430_v14 = vpop.xlane.xlu1 %1429 }
 0xdc8   :  { %v1437_v15 = vadd.f32 1e-12, %v1435_v13  ;;  %v1434_v16 = vmul.f32 0.03125, %v1430_v14 }
 0xdca   :  { %3250 = vrsqrt.f32 %v1437_v15  ;;  %v1436_v17 = vadd.f32 1e-12, %v1434_v16 }
 0xdcc   :  { %3252 = vrsqrt.f32 %v1436_v17 }
 0xdd7   :  { %v3251_v18 = vpop.eup %3250 }
 0xdd8   :  { %v1441_v22 = vmul.f32 %v3251_v18, %v1425_v61 }
 0xdd9   :  { %v3253_v23 = vpop.eup %3252 }
 0xdda   :  { %v1440_v11 = vmul.f32 %v3253_v23, %v1424_v63  ;;  %v1447_v24 = vmul.f32 %v2817_v21, %v1441_v22 }
 0xddc   :  { %v1446_v26 = vmul.f32 %v2817_v21, %v1440_v11  ;;  %v3511_v29 = vadd.f32 %v2818_v25, %v1447_v24 }
 0xdde   :  { %v3509_v28 = vadd.f32 %v2818_v25, %v1446_v26 }
 0xde0   :  { %3101 = vmatprep.mubr.msk.f32.mxu1 %vm253_vm8, %v3509_v28 }
 0xde1   :  { %3102 = vmatmul.mubr.msk.f32.vlgmr.msra.gmra.mxu1 %vm253_vm8, %v3511_v29 }
 0xde2   :  { %3106 = vmatprep.mubr.msk.f32.mxu1 %vm3333_vm9, %v3332_v19 }
 0xea1   :  { %v3103_v32 = vpop.f32.mrf.mxu1 }
 0xea2   :  { %v3519_v33 = vadd.f32 %v3103_v32, %v2819_v30 }
 0xea3   :  { %v1535_v9 = vpop.f32.mrf.mxu1 }
 0xea4   :  { %v3521_v34 = vadd.f32 %v2819_v30, %v1535_v9  ;;  %1625 = vrot.lane.b32.xlu0 %v3519_v33, %s3334_s0  ;;  %v1545_v37 = vmul.f32 0.25, %v3519_v33 }
 0xea6   :  { %1547 = vrot.lane.b32.xlu1 %v3521_v34, %s3334_s0  ;;  %v1544_v35 = vmul.f32 0.25, %v3521_v34 }
 0xf16   :  { %v1626_v36 = vpop.permute.xlu0 %1625 }
 0xf18   :  { %v1548_v20 = vpop.permute.xlu1 %1547 }
 0xf19   :  { %3105 = vmatpush3.xpose.msk.msra.mxu1 %vm408_vm10, %v1548_v20 }
 0xf1a   :  { %3109 = vmatprep.subr.mxu1 %v3332_v19 }
 0xf1c   :  { %3107 = vmatmul.mubr.msk.f32.vlgmr.msra.gmra.mxu1 %vm408_vm10, %v1544_v35 }
 0xf1d   :  { %3110 = vmatpush3.xpose.msk.msra.mxu1 %vm408_vm10, %v1626_v36  ;;  %3111 = vmatprep.mubr.msk.f32.mxu1 %vm3333_vm9, %v3332_v19 }
 0xf1e   :  { %3119 = vmatprep.subr.mxu1 %v3332_v19 }
 0xf20   :  { %3112 = vmatmul.mubr.msk.f32.vlgmr.msra.gmra.mxu1 %vm408_vm10, %v1545_v37 }
 0xf21   :  { %3121 = vmatprep.mubr.msk.f32.mxu1 %vm3333_vm9, %v3332_v19 }
 0xfdc   :  { %v1620_v38 = vpop.f32.mrf.mxu1 }
 0xfdd   :  { %v1621_v39 = vadd.f32 %v1620_v38, %v3431_v27  ;;  %v2219_v38 = vld [vmem:[#allocation2 + $0x1b0] sm:$0xff] }
 0xfde   :  { %v3108_v40 = vpop.f32.mrf.mxu1 }
 0xfdf   :  { %v1702_v41 = vsel %vm562_vm11, %v1621_v39, -inf  ;;  %v2216_v40 = vld [vmem:[#allocation2 + $0x198] sm:$0xff] }
 0xfe0   :  { %1703 = vmax.xlane.f32.xlu1 %v1702_v41  ;;  %v1698_v42 = vpop.f32.mrf.mxu1 }
 0xfe1   :  { %v1699_v43 = vadd.f32 %v1698_v42, %v3434_v31 }
 0xfe2   :  { %v3113_v44 = vpop.f32.mrf.mxu1 }
 0xfe3   :  { %v1705_v45 = vsel %vm562_vm11, %v1699_v43, -inf }
 0xfe4   :  { %1706 = vmax.xlane.f32.xlu0 %v1705_v45 }
 0xff1   :  { %1724 = vrot.lane.b32.xlu1 %v3521_v34, %s3335_s2 }
 0xff5   :  { %1878 = vrot.lane.b32.xlu1 %v3521_v34, %s3336_s6 }
 0xff9   :  { %1956 = vrot.lane.b32.xlu1 %v3519_v33, %s3336_s6 }
 0xffa   :  { %1800 = vrot.lane.b32.xlu0 %v3519_v33, %s3335_s2 }
0x1069   :  { %v1704_v46 = vpop.xlane.xlu1 %1703 }
0x106a   :  { %v1708_v47 = vsub.f32 %v1621_v39, %v1704_v46  ;;  %v2218_v39 = vld [vmem:[#allocation2 + $0x1a8] sm:$0xff] }
0x106c   :  { %v1710_v48 = vmul.f32 1.442695, %v1708_v47 }
0x106d   :  { %v1725_v49 = vpop.permute.xlu1 %1724  ;;  %v1707_v50 = vpop.xlane.xlu0 %1706 }
0x106e   :  { %3254 = vpow2.f32 %v1710_v48  ;;  %v1709_v51 = vsub.f32 %v1699_v43, %v1707_v50  ;;  %3115 = vmatpush3.msra.mxu0 %v1725_v49  ;;  %v2834_v49 = vld [vmem:[#allocation2 + $0x1b8] ss:$0 sm:$0xff] }
0x106f   :  { %3124 = vmatprep.subr.mxu0 %v3332_v19 }
0x1070   :  { %v1712_v52 = vmul.f32 1.442695, %v1709_v51 }
0x1071   :  { %v1801_v53 = vpop.permute.xlu0 %1800  ;;  %v1879_v58 = vpop.permute.xlu1 %1878 }
0x1072   :  { %3256 = vpow2.f32 %v1712_v52  ;;  %3120 = vmatpush3.msra.mxu1 %v1801_v53 }
0x1073   :  { %3129 = vmatprep.subr.mxu1 %v3332_v19 }
0x1075   :  { %v1957_v59 = vpop.permute.xlu1 %1956 }
0x107b   :  { %v3255_v54 = vpop.eup %3254 }
0x107c   :  { %v1714_v55 = vsel %vm562_vm11, %v3255_v54, 0.0 }
0x107d   :  { %1715 = vadd.xlane.f32.xlu1 %v1714_v55 }
0x107f   :  { %v3257_v56 = vpop.eup %3256 }
0x1080   :  { %v1717_v57 = vsel %vm562_vm11, %v3257_v56, 0.0 }
0x1081   :  { %1718 = vadd.xlane.f32.xlu0 %v1717_v57 }
0x108e   :  { %1954 = vrot.lane.b32.xlu1 %v1545_v37, %s3337_s7 }
0x1097   :  { %1876 = vrot.lane.b32.xlu0 %v1544_v35, %s3337_s7 }
0x1106   :  { %v1716_v6 = vpop.xlane.xlu1 %1715 }
0x1107   :  { %3258 = vrcp.f32 %v1716_v6 }
0x110a   :  { %v1719_v60 = vpop.xlane.xlu0 %1718  ;;  %v1955_v1 = vpop.permute.xlu1 %1954 }
0x110b   :  { %3260 = vrcp.f32 %v1719_v60 }
0x110e   :  { %v1877_v0 = vpop.permute.xlu0 %1876 }
0x1114   :  { %v3259_v4 = vpop.eup %3258 }
0x1115   :  { %v1721_v61 = vmul.f32 %v3259_v4, %v3255_v54 }
0x1117   :  { %3117 = vmatmul.mubr.msk.f32.vlgmr.msra.gmra.mxu0 %vm562_vm11, %v1721_v61 }
0x1118   :  { %v3261_v62 = vpop.eup %3260  ;;  %3125 = vmatpush3.xpose.msk.msra.mxu0 %vm408_vm10, %v1879_v58  ;;  %3126 = vmatprep.mubr.msk.f32.mxu0 %vm3333_vm9, %v3332_v19 }
0x1119   :  { %v1723_v63 = vmul.f32 %v3261_v62, %v3257_v56  ;;  %3134 = vmatprep.subr.mxu0 %v3332_v19 }
0x111b   :  { %3122 = vmatmul.mubr.msk.f32.vlgmr.msra.gmra.mxu1 %vm562_vm11, %v1723_v63  ;;  %3127 = vmatmul.mubr.msk.f32.vlgmr.msra.gmra.mxu0 %vm408_vm10, %v1877_v0 }
0x111c   :  { %3130 = vmatpush3.xpose.msk.msra.mxu1 %vm408_vm10, %v1957_v59  ;;  %3131 = vmatprep.mubr.msk.f32.mxu1 %vm3333_vm9, %v3332_v19 }
0x111d   :  { %3139 = vmatprep.subr.mxu1 %v3332_v19  ;;  %3136 = vmatprep.mubr.msk.f32.mxu0 %vm3333_vm9, %v3332_v19 }
0x111f   :  { %3132 = vmatmul.mubr.msk.f32.vlgmr.msra.gmra.mxu1 %vm408_vm10, %v1955_v1  ;;  %v2351_v1 = vld [vmem:[#allocation2 + $0x1e8] sm:$0xff] }
0x1120   :  { %3141 = vmatprep.mubr.msk.f32.mxu1 %vm3333_vm9, %v3332_v19 }
0x11d7   :  { %v3573_v2 = vpop.f32.mrf.mxu0 }
0x11d9   :  { %v3118_v3 = vpop.f32.mrf.mxu0 }
0x11da   :  { %v2348_v3 = vld [vmem:[#allocation2 + $0x1d0] sm:$0xff] }
0x11db   :  { %v3575_v5 = vpop.f32.mrf.mxu1  ;;  %v1950_v7 = vpop.f32.mrf.mxu0 }
0x11dc   :  { %v1951_v8 = vadd.f32 %v1950_v7, %v3431_v27 }
0x11dd   :  { %v3123_v10 = vpop.f32.mrf.mxu1  ;;  %v3128_v12 = vpop.f32.mrf.mxu0 }
0x11de   :  { %v2032_v13 = vsel %vm562_vm11, %v1951_v8, -inf }
0x11df   :  { %2033 = vmax.xlane.f32.xlu0 %v2032_v13  ;;  %v2028_v14 = vpop.f32.mrf.mxu1 }
0x11e0   :  { %v2029_v15 = vadd.f32 %v2028_v14, %v3434_v31 }
0x11e1   :  { %v3133_v16 = vpop.f32.mrf.mxu1 }
0x11e2   :  { %v2035_v17 = vsel %vm562_vm11, %v2029_v15, -inf }
0x11e3   :  { %2036 = vmax.xlane.f32.xlu1 %v2035_v17  ;;  %v2838_v17 = vld [vmem:[#allocation2 + $0x1c8] ss:$0 sm:$0xff] }
0x11f4   :  { %2054 = vrot.lane.b32.xlu1 %v3521_v34, %s3338_s8 }
0x1268   :  { %v2034_v18 = vpop.xlane.xlu0 %2033 }
0x1269   :  { %v2038_v21 = vsub.f32 %v1951_v8, %v2034_v18 }
0x126b   :  { %v2040_v22 = vmul.f32 1.442695, %v2038_v21 }
0x126c   :  { %v2037_v23 = vpop.xlane.xlu1 %2036 }
0x126d   :  { %3262 = vpow2.f32 %v2040_v22  ;;  %v2039_v27 = vsub.f32 %v2029_v15, %v2037_v23  ;;  %v2837_v15 = vld [vmem:[#allocation2 + $0x1c0] ss:$0 sm:$0xff] }
0x126f   :  { %v2042_v11 = vmul.f32 1.442695, %v2039_v27 }
0x1270   :  { %v2055_v24 = vpop.permute.xlu1 %2054 }
0x1271   :  { %3264 = vpow2.f32 %v2042_v11  ;;  %3135 = vmatpush3.msra.mxu0 %v2055_v24  ;;  %v2463_v24 = vld [vmem:[#allocation2 + $0x230] sm:$0xff] }
0x1272   :  { %3144 = vmatprep.subr.mxu0 %v2219_v38 }
0x127a   :  { %v3263_v25 = vpop.eup %3262 }
0x127b   :  { %v2044_v31 = vsel %vm562_vm11, %v3263_v25, 0.0 }
0x127c   :  { %2045 = vadd.xlane.f32.xlu0 %v2044_v31  ;;  %v2461_v31 = vld [vmem:[#allocation2 + $0x220] sm:$0xff] }
0x127e   :  { %v3265_v26 = vpop.eup %3264 }
0x127f   :  { %v2047_v30 = vsel %vm562_vm11, %v3265_v26, 0.0 }
0x1280   :  { %2048 = vadd.xlane.f32.xlu0 %v2047_v30  ;;  %v2459_v30 = vld [vmem:[#allocation2 + $0x210] sm:$0xff] }
0x1296   :  { %2130 = vrot.lane.b32.xlu0 %v3519_v33, %s3338_s8  ;;  %v2217_v33 = vld [vmem:[#allocation2 + $0x1a0] sm:$0xff] }
0x1305   :  { %v2046_v32 = vpop.xlane.xlu0 %2045 }
0x1306   :  { %3266 = vrcp.f32 %v2046_v32  ;;  %v2458_v32 = vld [vmem:[#allocation2 + $0x208] sm:$0xff] }
0x1309   :  { %v2049_v9 = vpop.xlane.xlu0 %2048 }
0x130a   :  { %3268 = vrcp.f32 %v2049_v9  ;;  %v2457_v9 = vld [vmem:[#allocation2 + $0x200] sm:$0xff] }
0x130d   :  { %v2131_v34 = vpop.permute.xlu0 %2130 }
0x130e   :  { %3140 = vmatpush3.msra.mxu1 %v2131_v34  ;;  %v2456_v34 = vld [vmem:[#allocation2 + $0x1f8] sm:$0xff] }
0x130f   :  { %3155 = vmatprep.subr.mxu1 %v2351_v1 }
0x1313   :  { %v3267_v20 = vpop.eup %3266 }
0x1314   :  { %v2051_v35 = vmul.f32 %v3267_v20, %v3263_v25  ;;  %v2462_v25 = vld [vmem:[#allocation2 + $0x228] sm:$0xff]  ;;  %v2839_v20 = vld [vmem:[#allocation2 + $0x1f0] ss:$0 sm:$0xff] }
0x1316   :  { %3137 = vmatmul.mubr.msk.f32.vlgmr.msra.gmra.mxu0 %vm562_vm11, %v2051_v35 }
0x1317   :  { %v3269_v36 = vpop.eup %3268  ;;  %3145 = vmatpush3.msra.mxu0 %v2219_v38 }
0x1318   :  { %v2053_v37 = vmul.f32 %v3269_v36, %v3265_v26  ;;  %3146 = vmatprep.subr.mxu0 %v2218_v39  ;;  %v2460_v26 = vld [vmem:[#allocation2 + $0x218] sm:$0xff] }
0x1319   :  { %3147 = vmatpush3.msra.mxu0 %v2218_v39 }
0x131a   :  { %3142 = vmatmul.mubr.msk.f32.vlgmr.msra.gmra.mxu1 %vm562_vm11, %v2053_v37  ;;  %3148 = vmatprep.subr.mxu0 %v2217_v33 }
0x131b   :  { %3149 = vmatpush3.msra.mxu0 %v2217_v33  ;;  %3156 = vmatpush3.msra.mxu1 %v2351_v1 }
0x131c   :  { %3150 = vmatprep.subr.mxu0 %v2216_v40 }
0x131d   :  { %3151 = vmatpush3.msra.mxu0 %v2216_v40 }
0x131e   :  { %3166 = vmatprep.subr.mxu0 %v2463_v24 }
0x13d6   :  { %v2126_v41 = vpop.f32.mrf.mxu0 }
0x13d7   :  { %2208 = vrot.lane.b32.xlu1 %v2126_v41, %s3339_s9 }
0x13d8   :  { %v3138_v42 = vpop.f32.mrf.mxu0 }
0x13da   :  { %v2202_v43 = vpop.f32.mrf.mxu1 }
0x13db   :  { %2210 = vrot.lane.b32.xlu1 %v2202_v43, %s3339_s9 }
0x13dc   :  { %v3143_v44 = vpop.f32.mrf.mxu1 }
0x1449   :  { %v2209_v45 = vpop.permute.xlu1 %2208 }
0x144a   :  { %v2214_v46 = vsel %vm408_vm10, %v3573_v2, %v2209_v45  ;;  %v2349_v2 = vld [vmem:[#allocation2 + $0x1d8] sm:$0xff] }
0x144b   :  { %3152 = vmatprep.mubr.msk.f32.mxu0 %vm253_vm8, %v2214_v46 }
0x144d   :  { %v2211_v47 = vpop.permute.xlu1 %2210 }
0x144e   :  { %v2215_v48 = vsel %vm408_vm10, %v3575_v5, %v2211_v47 }
0x144f   :  { %3153 = vmatmul.mubr.msk.f32.vlgmr.msra.gmra.mxu0 %vm253_vm8, %v2215_v48 }
0x1450   :  { %3167 = vmatpush3.msra.mxu0 %v2463_v24 }
0x1451   :  { %3168 = vmatprep.subr.mxu0 %v2462_v25 }
0x1452   :  { %3169 = vmatpush3.msra.mxu0 %v2462_v25  ;;  %v2846_v25 = vld [vmem:[#allocation2 + $0x248] ss:$0 sm:$0xff] }
0x1453   :  { %3170 = vmatprep.subr.mxu0 %v2461_v31 }
0x1454   :  { %3171 = vmatpush3.msra.mxu0 %v2461_v31 }
0x1455   :  { %3172 = vmatprep.subr.mxu0 %v2460_v26 }
0x1456   :  { %3173 = vmatpush3.msra.mxu0 %v2460_v26 }
0x1457   :  { %3174 = vmatprep.subr.mxu0 %v2459_v30 }
0x1458   :  { %3175 = vmatpush3.msra.mxu0 %v2459_v30 }
0x1459   :  { %3176 = vmatprep.subr.mxu0 %v2458_v32 }
0x145a   :  { %3177 = vmatpush3.msra.mxu0 %v2458_v32 }
0x145b   :  { %3178 = vmatprep.subr.mxu0 %v2457_v9 }
0x145c   :  { %3179 = vmatpush3.msra.mxu0 %v2457_v9 }
0x145d   :  { %3180 = vmatprep.subr.mxu0 %v2456_v34 }
0x145e   :  { %3181 = vmatpush3.msra.mxu0 %v2456_v34 }
0x150f   :  { %v3154_v50 = vpop.f32.mrf.mxu0 }
0x1510   :  { %v2303_v51 = vadd.f32 %v3154_v50, %v2834_v49 }
0x1511   :  { %v2297_v52 = vpop.f32.mrf.mxu0 }
0x1512   :  { %v2298_v53 = vadd.f32 %v2834_v49, %v2297_v52  ;;  %v2307_v54 = vadd.f32 %v2303_v51, %v3511_v29 }
0x1514   :  { %v2313_v55 = vsel %vm253_vm8, %v2307_v54, 0.0  ;;  %v2306_v56 = vadd.f32 %v2298_v53, %v3509_v28  ;;  %v2350_v28 = vld [vmem:[#allocation2 + $0x1e0] sm:$0xff] }
0x1515   :  { %2314 = vadd.xlane.f32.xlu1 %v2313_v55  ;;  %3157 = vmatprep.subr.mxu1 %v2350_v28 }
0x1516   :  { %v2310_v57 = vsel %vm253_vm8, %v2306_v56, 0.0  ;;  %3158 = vmatpush3.msra.mxu1 %v2350_v28 }
0x1517   :  { %2311 = vadd.xlane.f32.xlu0 %v2310_v57  ;;  %3159 = vmatprep.subr.mxu1 %v2349_v2 }
0x1518   :  { %3160 = vmatpush3.msra.mxu1 %v2349_v2 }
0x1519   :  { %3161 = vmatprep.subr.mxu1 %v2348_v3 }
0x151a   :  { %3162 = vmatpush3.msra.mxu1 %v2348_v3 }
0x151b   :  { %3185 = vmatprep.subr.mxu1 %v3332_v19 }
0x159e   :  { %v2315_v58 = vpop.xlane.xlu1 %2314 }
0x159f   :  { %v2317_v59 = vmul.f32 0.03125, %v2315_v58 }
0x15a0   :  { %v2312_v6 = vpop.xlane.xlu0 %2311 }
0x15a1   :  { %v2316_v60 = vmul.f32 0.03125, %v2312_v6  ;;  %v2319_v4 = vsub.f32 %v2307_v54, %v2317_v59 }
0x15a3   :  { %v2318_v61 = vsub.f32 %v2306_v56, %v2316_v60  ;;  %v2321_v0 = vmul.f32 %v2319_v4, %v2319_v4  ;;  %v2842_v56 = vld [vmem:[#allocation2 + $0x238] ss:$0 sm:$0xff] }
0x15a5   :  { %v2320_v62 = vmul.f32 %v2318_v61, %v2318_v61  ;;  %v2325_v29 = vsel %vm253_vm8, %v2321_v0, 0.0 }
0x15a7   :  { %v2322_v63 = vsel %vm253_vm8, %v2320_v62, 0.0 }
0x15a8   :  { %2323 = vadd.xlane.f32.xlu0 %v2322_v63 }
0x15ac   :  { %2326 = vadd.xlane.f32.xlu0 %v2325_v29 }
0x1631   :  { %v2324_v5 = vpop.xlane.xlu0 %2323 }
0x1632   :  { %v2328_v7 = vmul.f32 0.03125, %v2324_v5 }
0x1634   :  { %v2330_v8 = vadd.f32 1e-12, %v2328_v7 }
0x1635   :  { %v2327_v10 = vpop.xlane.xlu0 %2326 }
0x1636   :  { %3270 = vrsqrt.f32 %v2330_v8  ;;  %v2329_v12 = vmul.f32 0.03125, %v2327_v10  ;;  %v2600_v10 = vld [vmem:[#allocation2 + $0x268] sm:$0xff] }
0x1638   :  { %v2331_v13 = vadd.f32 1e-12, %v2329_v12  ;;  %v2599_v12 = vld [vmem:[#allocation2 + $0x260] sm:$0xff] }
0x163a   :  { %3272 = vrsqrt.f32 %v2331_v13  ;;  %v2598_v13 = vld [vmem:[#allocation2 + $0x258] sm:$0xff] }
0x1643   :  { %v3271_v14 = vpop.eup %3270 }
0x1644   :  { %v2334_v16 = vmul.f32 %v3271_v14, %v2318_v61  ;;  %v2597_v14 = vld [vmem:[#allocation2 + $0x250] sm:$0xff] }
0x1646   :  { %v2340_v18 = vmul.f32 %v2837_v15, %v2334_v16 }
0x1647   :  { %v3273_v21 = vpop.eup %3272 }
0x1648   :  { %v2335_v22 = vmul.f32 %v3273_v21, %v2319_v4  ;;  %v3604_v23 = vadd.f32 %v2838_v17, %v2340_v18 }
0x164a   :  { %v2341_v27 = vmul.f32 %v2837_v15, %v2335_v22  ;;  %3163 = vmatprep.mubr.msk.f32.mxu1 %vm253_vm8, %v3604_v23 }
0x164c   :  { %v2347_v11 = vadd.f32 %v2838_v17, %v2341_v27  ;;  %v2845_v27 = vld [vmem:[#allocation2 + $0x240] ss:$0 sm:$0xff] }
0x164e   :  { %3164 = vmatmul.mubr.msk.f32.vlgmr.msra.gmra.mxu1 %vm253_vm8, %v2347_v11 }
0x164f   :  { %3193 = vmatprep.mubr.msk.f32.mxu1 %vm3333_vm9, %v3332_v19  ;;  %3186 = vmatpush3.msra.mxu1 %v2600_v10 }
0x1650   :  { %3187 = vmatprep.subr.mxu1 %v3332_v19 }
0x1651   :  { %3188 = vmatpush3.msra.mxu1 %v2599_v12 }
0x1652   :  { %3189 = vmatprep.subr.mxu1 %v3332_v19 }
0x1653   :  { %3190 = vmatpush3.msra.mxu1 %v2598_v13 }
0x1654   :  { %3191 = vmatprep.subr.mxu1 %v3332_v19 }
0x1655   :  { %3192 = vmatpush3.msra.mxu1 %v2597_v14 }
0x1656   :  { %3196 = vmatprep.subr.mxu1 %v3332_v19 }
0x170e   :  { %v3165_v35 = vpop.f32.mrf.mxu1 }
0x170f   :  { %v2435_v36 = vadd.f32 %v3165_v35, %v2839_v20  ;;  %v2683_v35 = vld [vmem:[#allocation2 + $0x290] sm:$0xff] }
0x1710   :  { %v2429_v37 = vpop.f32.mrf.mxu1 }
0x1711   :  { %v2441_v38 = vmul.f32 %v2435_v36, %v2435_v36  ;;  %v2430_v39 = vadd.f32 %v2839_v20, %v2429_v37  ;;  %v2439_v53 = vmul.f32 0.5, %v2435_v36  ;;  %v2681_v37 = vld [vmem:[#allocation2 + $0x280] sm:$0xff] }
0x1713   :  { %v2443_v33 = vmul.f32 %v2441_v38, %v2435_v36  ;;  %v2440_v40 = vmul.f32 %v2430_v39, %v2430_v39  ;;  %v2438_v51 = vmul.f32 0.5, %v2430_v39  ;;  %v2680_v38 = vld [vmem:[#allocation2 + $0x278] sm:$0xff] }
0x1715   :  { %v2445_v41 = vmul.f32 0.044715, %v2443_v33  ;;  %v2442_v42 = vmul.f32 %v2440_v40, %v2430_v39 }
0x1717   :  { %v2447_v43 = vadd.f32 %v2445_v41, %v2435_v36  ;;  %v2444_v44 = vmul.f32 0.044715, %v2442_v42  ;;  %v2682_v36 = vld [vmem:[#allocation2 + $0x288] sm:$0xff] }
0x1719   :  { %v2449_v45 = vmul.f32 0.7978846, %v2447_v43  ;;  %v2446_v46 = vadd.f32 %v2444_v44, %v2430_v39  ;;  %v2847_v39 = vld [vmem:[#allocation2 + $0x270] ss:$0 sm:$0xff]  ;;  %v2849_v43 = vld [vmem:[#allocation2 + $0x298] ss:$0 sm:$0xff] }
0x171b   :  { %3274 = vtanh.f32 %v2449_v45  ;;  %v2448_v47 = vmul.f32 0.7978846, %v2446_v46 }
0x171d   :  { %3276 = vtanh.f32 %v2448_v47 }
0x1728   :  { %v3275_v48 = vpop.eup %3274 }
0x1729   :  { %v2453_v50 = vadd.f32 1.0, %v3275_v48 }
0x172a   :  { %v3277_v49 = vpop.eup %3276 }
0x172b   :  { %v2452_v52 = vadd.f32 1.0, %v3277_v49  ;;  %v2455_v55 = vmul.f32 %v2453_v50, %v2439_v53 }
0x172d   :  { %v2454_v54 = vmul.f32 %v2452_v52, %v2438_v51 }
0x172f   :  { %3182 = vmatprep.mubr.msk.f32.mxu0 %vm1330_vm12, %v2454_v54 }
0x1730   :  { %3183 = vmatmul.mubr.msk.f32.vlgmr.msra.gmra.mxu0 %vm1330_vm12, %v2455_v55 }
0x17f0   :  { %v3184_v57 = vpop.f32.mrf.mxu0 }
0x17f1   :  { %v2547_v58 = vadd.f32 %v3184_v57, %v2842_v56 }
0x17f2   :  { %v2541_v59 = vpop.f32.mrf.mxu0 }
0x17f3   :  { %v2542_v6 = vadd.f32 %v2842_v56, %v2541_v59  ;;  %v2551_v60 = vadd.f32 %v2547_v58, %v2347_v11 }
0x17f5   :  { %v2557_v4 = vsel %vm253_vm8, %v2551_v60, 0.0  ;;  %v2550_v61 = vadd.f32 %v2542_v6, %v3604_v23 }
0x17f6   :  { %2558 = vadd.xlane.f32.xlu1 %v2557_v4 }
0x17f7   :  { %v2554_v62 = vsel %vm253_vm8, %v2550_v61, 0.0 }
0x17f8   :  { %2555 = vadd.xlane.f32.xlu0 %v2554_v62 }
0x187f   :  { %v2559_v63 = vpop.xlane.xlu1 %2558 }
0x1880   :  { %v2561_v0 = vmul.f32 0.03125, %v2559_v63 }
0x1881   :  { %v2556_v29 = vpop.xlane.xlu0 %2555 }
0x1882   :  { %v2563_v1 = vsub.f32 %v2551_v60, %v2561_v0  ;;  %v2560_v28 = vmul.f32 0.03125, %v2556_v29 }
0x1884   :  { %v2562_v2 = vsub.f32 %v2550_v61, %v2560_v28  ;;  %v2565_v3 = vmul.f32 %v2563_v1, %v2563_v1 }
0x1886   :  { %v2569_v5 = vsel %vm253_vm8, %v2565_v3, 0.0  ;;  %v2564_v7 = vmul.f32 %v2562_v2, %v2562_v2 }
0x1887   :  { %2570 = vadd.xlane.f32.xlu1 %v2569_v5 }
0x1888   :  { %v2566_v8 = vsel %vm253_vm8, %v2564_v7, 0.0 }
0x1889   :  { %2567 = vadd.xlane.f32.xlu0 %v2566_v8 }
0x1910   :  { %v2571_v15 = vpop.xlane.xlu1 %2570 }
0x1911   :  { %v2573_v16 = vmul.f32 0.03125, %v2571_v15 }
0x1912   :  { %v2568_v17 = vpop.xlane.xlu0 %2567 }
0x1913   :  { %v2575_v18 = vadd.f32 1e-12, %v2573_v16  ;;  %v2572_v21 = vmul.f32 0.03125, %v2568_v17 }
0x1915   :  { %3278 = vrsqrt.f32 %v2575_v18  ;;  %v2574_v22 = vadd.f32 1e-12, %v2572_v21 }
0x1917   :  { %3280 = vrsqrt.f32 %v2574_v22 }
0x1922   :  { %v3279_v23 = vpop.eup %3278 }
0x1923   :  { %v2579_v11 = vmul.f32 %v3279_v23, %v2563_v1 }
0x1924   :  { %v3281_v24 = vpop.eup %3280 }
0x1925   :  { %v2578_v31 = vmul.f32 %v3281_v24, %v2562_v2  ;;  %v2585_v26 = vmul.f32 %v2845_v27, %v2579_v11 }
0x1927   :  { %v2584_v30 = vmul.f32 %v2845_v27, %v2578_v31  ;;  %v2591_v32 = vadd.f32 %v2846_v25, %v2585_v26 }
0x1929   :  { %v2590_v9 = vadd.f32 %v2846_v25, %v2584_v30  ;;  %v2593_v34 = vrot.slane %v2591_v32, 7 }
0x192b   :  { %v2596_v20 = vsel %vm2595_vm13, %v2590_v9, %v2593_v34 }
0x192c   :  { %3194 = vmatmul.mubr.msk.f32.vlgmr.msra.gmra.mxu1 %vm253_vm8, %v2596_v20 }
0x192d   :  { %3204 = vmatprep.mubr.msk.f32.mxu1 %vm3333_vm9, %v3332_v19  ;;  %3197 = vmatpush3.msra.mxu1 %v2683_v35 }
0x192e   :  { %3198 = vmatprep.subr.mxu1 %v3332_v19 }
0x192f   :  { %3199 = vmatpush3.msra.mxu1 %v2682_v36 }
0x1930   :  { %3200 = vmatprep.subr.mxu1 %v3332_v19 }
0x1931   :  { %3201 = vmatpush3.msra.mxu1 %v2681_v37 }
0x1932   :  { %3202 = vmatprep.subr.mxu1 %v3332_v19 }
0x1933   :  { %3203 = vmatpush3.msra.mxu1 %v2680_v38 }
0x19ec   :  { %v2675_v33 = vpop.f32.mrf.mxu1 }
0x19ed   :  { %v2676_v40 = vadd.f32 %v2847_v39, %v2675_v33 }
0x19ee   :  { %v3195_v41 = vpop.f32.mrf.mxu1 }
0x19ef   :  { %3282 = vtanh.f32 %v2676_v40 }
0x19fc   :  { %v3283_v42 = vpop.eup %3282 }
0x19fd   :  { %3205 = vmatmul.mubr.msk.f32.vlgmr.msra.gmra.mxu1 %vm253_vm8, %v3283_v42 }
0x1abd   :  { %v2758_v44 = vpop.f32.mrf.mxu1 }
0x1abe   :  { %v2759_v45 = vadd.f32 %v2849_v43, %v2758_v44 }
0x1abf   :  { %v3206_v46 = vpop.f32.mrf.mxu1 }
0x1ac0   :  { %2763 = vst.msk [vmem:[#allocation5] sm:$0x3] %vm2762_vm14, %v2759_v45 }
0x1ac1   :  { %3315 = shalt.err (!%p3312_p9)
}
0x1ac2   :  { %2773 = dma.vmem_to_hbm [thread:$0]  %s2771_s11, 32, %s3636_s4, [#allocation4]  }
0x1ac3   :  { %3326 = dma.done.wait [#allocation4], 32  }
0x1ac4   :  { %3327 = vsyncadd [#allocation4], 4294967264 }
0x1ac5   :  { %2777 = vsyncpa [#allocation3], 1 }
0x1ac6   :  { %2778 = vsyncpa [#allocation4], 1 }

</bundles_post_ra>
